<compile_context>
chip_gen: v5e
topology: v5e:2x2
jax: 0.10.0
libtpu: 0.0.40
codegen_flags: <defaults>
</compile_context>

<pallas_src>
import math

import jax
import jax.numpy as jnp
from jax.experimental import pallas as pl
from jax.experimental.pallas import tpu as pltpu

MATMUL_DTYPE = jnp.bfloat16            # MXU operand dtype (accumulate in f32)


def _round_up(x, m):
    return ((x + m - 1) // m) * m


def _default_vmem_limit():
    """~3/4 of physical VMEM (96 MiB on v5e/v6e, 48 MiB on v7x), with fallback."""
    try:
        cap = int(pltpu.get_tpu_info().vmem_capacity_bytes)
        return min((cap * 3) // 4, 112 * 1024 * 1024)
    except Exception:          # conservative fallback (also covers interpret mode)
        return 48 * 1024 * 1024


VMEM_LIMIT = _default_vmem_limit()


# ---------------------------------------------------------------------------
# Kernel 1: row-tiled matmul + bias (used for ConvTranspose3d k=2 s=2)
# ---------------------------------------------------------------------------
def _matmul_bias_kernel(x_ref, w_ref, b_ref, o_ref):
    acc = jnp.dot(x_ref[...], w_ref[...], preferred_element_type=jnp.float32)
    o_ref[...] = (acc + b_ref[...]).astype(o_ref.dtype)


def matmul_bias(x, w, b, out_dtype=jnp.float32, tm_max=1024):
    """(M, K) @ (K, N) + b[N] -> (M, N), tiled over M.

    K (= Cin) is tiny so the weight stays resident; the output width is padded
    to a multiple of 128 so every store is lane-dense / unmasked."""
    M, K = x.shape
    _, N0 = w.shape
    Nc = _round_up(N0, 128)
    if Nc != N0:
        w = jnp.pad(w, ((0, 0), (0, Nc - N0)))
        b = jnp.pad(b, (0, Nc - N0))
    tm = min(tm_max, _round_up(M, 8))
    Mp = _round_up(M, tm)
    if Mp != M:
        x = jnp.pad(x, ((0, Mp - M), (0, 0)))

    out = pl.pallas_call(
        _matmul_bias_kernel,
        out_shape=jax.ShapeDtypeStruct((Mp, Nc), out_dtype),
        grid_spec=pltpu.PrefetchScalarGridSpec(
            num_scalar_prefetch=0,
            grid=(Mp // tm,),
            in_specs=[
                pl.BlockSpec((tm, K), lambda i: (i, 0)),
                pl.BlockSpec((K, Nc), lambda i: (0, 0)),   # K = Cin: resident
                pl.BlockSpec((1, Nc), lambda i: (0, 0)),
            ],
            out_specs=pl.BlockSpec((tm, Nc), lambda i: (i, 0)),
        ),
        compiler_params=pltpu.CompilerParams(
            dimension_semantics=("parallel",),
            vmem_limit_bytes=VMEM_LIMIT,
        ),
    )(x, w, b.reshape(1, Nc))
    if Mp != M:
        out = out[:M]
    if Nc != N0:
        out = out[:, :N0]
    return out


# ---------------------------------------------------------------------------
# Kernel 2: fused Conv3d k=3 p=1 over cat(up, x2)  +  BatchNorm statistics
#   grid = (N, D2, 3 depth taps); depth-tap axis is the reduction ("arbitrary")
#   The f32 output block IS the accumulator (its index_map ignores kd).
# ---------------------------------------------------------------------------
def _conv_bn_kernel(xin_ref, w_ref, b_ref, o_ref, s1_ref, s2_ref):
    kd = pl.program_id(2)
    Hp, Wp, cin2 = xin_ref.shape[2], xin_ref.shape[3], xin_ref.shape[4]
    H2, W2 = Hp - 2, Wp - 2

    plane = xin_ref[0, 0]          # (Hp, Wp, 2C) bf16 -- one padded depth slice
    w_kd = w_ref[kd]               # (9, 2C, Cout)    -- resident weight, kd slice

    # 9 statically unrolled in-plane taps; ONE local sum, ONE output RMW per kd.
    tap_sum = None
    for t in range(9):
        kh, kw = divmod(t, 3)
        a = plane[kh:kh + H2, kw:kw + W2, :].reshape(H2 * W2, cin2)
        contrib = jnp.dot(a, w_kd[t], preferred_element_type=jnp.float32)
        tap_sum = contrib if tap_sum is None else tap_sum + contrib

    @pl.when(kd == 0)
    def _():
        o_ref[0, 0] = tap_sum + b_ref[...]          # init with conv bias

    @pl.when(kd > 0)
    def _():
        o_ref[0, 0] += tap_sum                      # accumulate into resident block

    @pl.when(kd == pl.num_programs(2) - 1)
    def _():
        acc = o_ref[0, 0]                           # f32 accumulated plane
        s1_ref[0, 0] = jnp.sum(acc, axis=0, keepdims=True)
        s2_ref[0, 0] = jnp.sum(acc * acc, axis=0, keepdims=True)


def conv3x3_bn_stats(cat_pad, w_all, bias):
    """cat_pad: (N, D2+2, H2+2, W2+2, 2C) bf16 (spatially 1-padded, channels-last
       concat of up||x2).  w_all: (3, 9, 2C, Cout) bf16.  Returns the conv output
       (N, D2, H2*W2, Cout) f32 and per-plane sum / sum-of-squares (N, D2, 1, Cout)."""
    N, Dp, Hp, Wp, Cin2 = cat_pad.shape
    D2, H2, W2 = Dp - 2, Hp - 2, Wp - 2
    Cout = w_all.shape[-1]

    out_shape = (
        jax.ShapeDtypeStruct((N, D2, H2 * W2, Cout), jnp.float32),
        jax.ShapeDtypeStruct((N, D2, 1, Cout), jnp.float32),
        jax.ShapeDtypeStruct((N, D2, 1, Cout), jnp.float32),
    )
    return pl.pallas_call(
        _conv_bn_kernel,
        out_shape=out_shape,
        grid_spec=pltpu.PrefetchScalarGridSpec(
            num_scalar_prefetch=0,
            grid=(N, D2, 3),
            in_specs=[
                # fused (up||x2) padded input, one depth slice per (d, kd)
                pl.BlockSpec((1, 1, Hp, Wp, Cin2),
                             lambda n, d, kd: (n, d + kd, 0, 0, 0)),
                # whole conv weight resident (constant index_map -> single DMA)
                pl.BlockSpec((3, 9, Cin2, Cout), lambda n, d, kd: (0, 0, 0, 0)),
                pl.BlockSpec((1, Cout), lambda n, d, kd: (0, 0)),
            ],
            out_specs=(
                pl.BlockSpec((1, 1, H2 * W2, Cout), lambda n, d, kd: (n, d, 0, 0)),
                pl.BlockSpec((1, 1, 1, Cout), lambda n, d, kd: (n, d, 0, 0)),
                pl.BlockSpec((1, 1, 1, Cout), lambda n, d, kd: (n, d, 0, 0)),
            ),
        ),
        compiler_params=pltpu.CompilerParams(
            dimension_semantics=("parallel", "parallel", "arbitrary"),
            vmem_limit_bytes=VMEM_LIMIT,
        ),
    )(cat_pad, w_all, bias.reshape(1, Cout))


# ---------------------------------------------------------------------------
# Kernel 3: affine (BN scale/shift) + ReLU on a lane-dense folded view
# ---------------------------------------------------------------------------
def _affine_relu_kernel(y_ref, s_ref, t_ref, o_ref):
    o_ref[...] = jnp.maximum(y_ref[...] * s_ref[...] + t_ref[...], 0.0)


def affine_relu(y, scale, shift, tm_max=1024, target_lane=1024):
    """relu(y * scale + shift), y: (M, C), per-channel scale/shift."""
    M, C = y.shape
    # Fold r rows per lane group so the kernel-visible last dim is a multiple of
    # 128 and as wide as possible (<= target_lane) -> unmasked, lane-dense stores.
    r = 128 // math.gcd(C, 128)
    if M % r != 0:
        r = 1
    else:
        while (M % (2 * r) == 0) and (2 * r * C <= target_lane):
            r *= 2
    rows, lane = M // r, r * C
    y2 = y.reshape(rows, lane)
    s2 = jnp.tile(scale, r).reshape(1, lane)
    t2 = jnp.tile(shift, r).reshape(1, lane)

    tm = min(tm_max, _round_up(rows, 8))
    rows_p = _round_up(rows, tm)
    if rows_p != rows:
        y2 = jnp.pad(y2, ((0, rows_p - rows), (0, 0)))

    out = pl.pallas_call(
        _affine_relu_kernel,
        out_shape=jax.ShapeDtypeStruct((rows_p, lane), jnp.float32),
        grid_spec=pltpu.PrefetchScalarGridSpec(
            num_scalar_prefetch=0,
            grid=(rows_p // tm,),
            in_specs=[
                pl.BlockSpec((tm, lane), lambda i: (i, 0)),
                pl.BlockSpec((1, lane), lambda i: (0, 0)),
                pl.BlockSpec((1, lane), lambda i: (0, 0)),
            ],
            out_specs=pl.BlockSpec((tm, lane), lambda i: (i, 0)),
        ),
        compiler_params=pltpu.CompilerParams(
            dimension_semantics=("parallel",),
            vmem_limit_bytes=VMEM_LIMIT,
        ),
    )(y2, s2, t2)
    if rows_p != rows:
        out = out[:rows]
    return out.reshape(M, C)


# ---------------------------------------------------------------------------
# Decoder forward
# ---------------------------------------------------------------------------
def decoder_forward(x1, x2, params):
    wt, bt = params["wt"], params["bt"]          # ConvTranspose3d: (Cin,Cout,2,2,2),(Cout,)
    wc, bc = params["wc"], params["bc"]          # Conv3d: (Cout, 2*Cout, 3,3,3), (Cout,)
    gamma, beta = params["gamma"], params["beta"]
    eps = 1e-5

    N, Cin, D, H, W = x1.shape
    Cout = wt.shape[1]
    D2, H2, W2 = 2 * D, 2 * H, 2 * W

    # --- ConvTranspose3d(kernel=2, stride=2) as one lane-dense matmul --------
    x1_cl = jnp.transpose(x1, (0, 2, 3, 4, 1)).reshape(N * D * H * W, Cin)
    wt_mat = jnp.transpose(wt, (0, 2, 3, 4, 1)).reshape(Cin, 8 * Cout)
    bt_mat = jnp.broadcast_to(bt, (8, Cout)).reshape(8 * Cout)
    up = matmul_bias(x1_cl.astype(MATMUL_DTYPE), wt_mat.astype(MATMUL_DTYPE),
                     bt_mat, out_dtype=MATMUL_DTYPE)          # (N*D*H*W, 8*Cout)
    # interleave 2x2x2 blocks into the upsampled grid (single XLA shuffle)
    up = up.reshape(N, D, H, W, 2, 2, 2, Cout)
    up = jnp.transpose(up, (0, 1, 4, 2, 5, 3, 6, 7)).reshape(N, D2, H2, W2, Cout)

    # --- fused Conv3d(k=3,p=1) over cat(up, x2) + BN statistics --------------
    x2_cl = jnp.transpose(x2, (0, 2, 3, 4, 1)).astype(MATMUL_DTYPE)
    cat = jnp.concatenate([up, x2_cl], axis=-1)          # channels-last concat (cheap)
    cat_pad = jnp.pad(cat, ((0, 0), (1, 1), (1, 1), (1, 1), (0, 0)))
    # single fused weight: one K = 2*Cout MXU push per tap
    w_all = jnp.transpose(wc, (2, 3, 4, 1, 0)).reshape(3, 9, 2 * Cout, Cout)
    conv, psum, psq = conv3x3_bn_stats(cat_pad, w_all.astype(MATMUL_DTYPE), bc)

    # --- BatchNorm3d (training-mode biased batch stats) + ReLU ---------------
    M2 = N * D2 * H2 * W2
    mean = jnp.sum(psum, axis=(0, 1, 2)) / M2
    var = jnp.maximum(jnp.sum(psq, axis=(0, 1, 2)) / M2 - mean * mean, 0.0)
    scale = gamma / jnp.sqrt(var + eps)
    shift = beta - mean * scale
    out = affine_relu(conv.reshape(M2, Cout), scale, shift)      # (M2, Cout)

    out = out.reshape(N, D2, H2, W2, Cout)
    # TODO(synk): NDHWC->NCDHW transpose left as a single XLA pass (fusing it
    # into affine_relu's out_spec would need a cross-block channel scatter).
    return jnp.transpose(out, (0, 4, 1, 2, 3))


# ---------------------------------------------------------------------------
# References for validation
# ---------------------------------------------------------------------------
def matched_ref(x1, x2, params):
    """Pure-JAX reference that applies the same bf16 matmul-operand casts."""
    wt, bt = params["wt"], params["bt"]
    wc, bc = params["wc"], params["bc"]
    gamma, beta = params["gamma"], params["beta"]
    N, Cin, D, H, W = x1.shape
    Cout = wt.shape[1]
    D2, H2, W2 = 2 * D, 2 * H, 2 * W

    x1_cl = jnp.transpose(x1, (0, 2, 3, 4, 1)).reshape(-1, Cin).astype(MATMUL_DTYPE)
    wt_mat = jnp.transpose(wt, (0, 2, 3, 4, 1)).reshape(Cin, 8 * Cout).astype(MATMUL_DTYPE)
    bt_mat = jnp.broadcast_to(bt, (8, Cout)).reshape(8 * Cout)
    up = (jnp.dot(x1_cl, wt_mat, preferred_element_type=jnp.float32)
          + bt_mat).astype(MATMUL_DTYPE)
    up = up.reshape(N, D, H, W, 2, 2, 2, Cout)
    up = jnp.transpose(up, (0, 1, 4, 2, 5, 3, 6, 7)).reshape(N, D2, H2, W2, Cout)

    x2_cl = jnp.transpose(x2, (0, 2, 3, 4, 1)).astype(MATMUL_DTYPE)
    cat = jnp.concatenate([up, x2_cl], axis=-1)
    pad = jnp.pad(cat, ((0, 0), (1, 1), (1, 1), (1, 1), (0, 0)))
    wmat = jnp.transpose(wc, (2, 3, 4, 1, 0)).astype(MATMUL_DTYPE)  # (3,3,3,2C,C)
    conv = jnp.zeros((N, D2, H2, W2, Cout), jnp.float32) + bc
    for kd in range(3):
        for kh in range(3):
            for kw in range(3):
                sl = pad[:, kd:kd + D2, kh:kh + H2, kw:kw + W2, :]
                conv = conv + jnp.einsum("ndhwc,co->ndhwo", sl, wmat[kd, kh, kw],
                                         preferred_element_type=jnp.float32)
    mean = jnp.mean(conv, axis=(0, 1, 2, 3))
    var = jnp.mean((conv - mean) ** 2, axis=(0, 1, 2, 3))
    out = jnp.maximum((conv - mean) / jnp.sqrt(var + 1e-5) * gamma + beta, 0.0)
    return jnp.transpose(out, (0, 4, 1, 2, 3))


def ref_forward(x1, x2, params):
    """Full-f32 reference, straight from the PyTorch math (NCDHW)."""
    wt, bt = params["wt"], params["bt"]
    wc, bc = params["wc"], params["bc"]
    gamma, beta = params["gamma"], params["beta"]
    N, Cin, D, H, W = x1.shape
    Cout = wt.shape[1]
    D2, H2, W2 = 2 * D, 2 * H, 2 * W

    up = jnp.einsum("ncdhw,coxyz->nodxhywz", x1, wt)
    up = up.reshape(N, Cout, D2, H2, W2) + bt[None, :, None, None, None]

    cat = jnp.concatenate([up, x2], axis=1)
    pad = jnp.pad(cat, ((0, 0), (0, 0), (1, 1), (1, 1), (1, 1)))
    conv = jnp.zeros((N, Cout, D2, H2, W2), jnp.float32)
    for kd in range(3):
        for kh in range(3):
            for kw in range(3):
                conv = conv + jnp.einsum(
                    "ncdhw,oc->nodhw",
                    pad[:, :, kd:kd + D2, kh:kh + H2, kw:kw + W2],
                    wc[:, :, kd, kh, kw])
    conv = conv + bc[None, :, None, None, None]

    mean = jnp.mean(conv, axis=(0, 2, 3, 4), keepdims=True)
    var = jnp.mean((conv - mean) ** 2, axis=(0, 2, 3, 4), keepdims=True)
    xhat = (conv - mean) / jnp.sqrt(var + 1e-5)
    out = gamma[None, :, None, None, None] * xhat + beta[None, :, None, None, None]
    return jnp.maximum(out, 0.0)


# ---------------------------------------------------------------------------
if __name__ == "__main__":
    key = jax.random.PRNGKey(0)
    k1, k2, k3, k4, k5, k6 = jax.random.split(key, 6)

    N, Cin, Cout = 2, 8, 4
    D = H = W = 4

    params = dict(
        wt=jax.random.normal(k1, (Cin, Cout, 2, 2, 2), jnp.float32) * 0.1,
        bt=jax.random.normal(k2, (Cout,), jnp.float32) * 0.1,
        wc=jax.random.normal(k3, (Cout, 2 * Cout, 3, 3, 3), jnp.float32) * 0.1,
        bc=jax.random.normal(k4, (Cout,), jnp.float32) * 0.1,
        gamma=jnp.ones((Cout,), jnp.float32),   # PyTorch BatchNorm3d defaults
        beta=jnp.zeros((Cout,), jnp.float32),
    )

    x1 = jax.random.normal(k5, (N, Cin, D, H, W), jnp.float32)
    x2 = jax.random.normal(k6, (N, Cout, 2 * D, 2 * H, 2 * W), jnp.float32)

    out = jax.jit(decoder_forward)(x1, x2, params)
    out = jax.block_until_ready(out)
    assert out.shape == (N, Cout, 2 * D, 2 * H, 2 * W)

    # tight check vs a reference using the same bf16 matmul-operand precision
    ref_m = matched_ref(x1, x2, params)
    assert jnp.allclose(out, ref_m, atol=5e-3, rtol=5e-3), (
        float(jnp.max(jnp.abs(out - ref_m))))

    # loose sanity check vs the full-f32 PyTorch-equivalent math
    ref_f = ref_forward(x1, x2, params)
    assert jnp.allclose(out, ref_f, atol=1e-1, rtol=1e-1), (
        float(jnp.max(jnp.abs(out - ref_f))))

    print("KERNEL_OK")
</pallas_src>

<mosaic_0001>
module attributes {stable_mosaic.version = 11 : i64} {
  func.func @_matmul_bias_kernel(%arg0: i32, %arg1: memref<128x8xbf16, #tpu.memory_space<vmem>>, %arg2: memref<8x128xbf16, #tpu.memory_space<vmem>>, %arg3: memref<1x128xf32, #tpu.memory_space<vmem>>, %arg4: memref<128x128xbf16, #tpu.memory_space<vmem>>) attributes {dimension_semantics = [#tpu.dimension_semantics<parallel>], iteration_bounds = array<i64: 1>, scalar_prefetch = 0 : i64, scratch_operands = 0 : i64, tpu.core_type = #tpu.core_type<tc>, window_params = [{transform_indices = @transform_0, window_bounds = array<i64: 128, 8>}, {pipeline_mode = #tpu.pipeline_mode<synchronous>, transform_indices = @transform_1, window_bounds = array<i64: 8, 128>}, {pipeline_mode = #tpu.pipeline_mode<synchronous>, transform_indices = @transform_2, window_bounds = array<i64: 1, 128>}, {transform_indices = @transform_3, window_bounds = array<i64: 128, 128>}]} {
    %c0 = arith.constant 0 : index
    %c0_0 = arith.constant 0 : index
    %0 = vector.load %arg1[%c0, %c0_0] : memref<128x8xbf16, #tpu.memory_space<vmem>>, vector<128x8xbf16>
    %c0_1 = arith.constant 0 : index
    %c0_2 = arith.constant 0 : index
    %1 = vector.load %arg2[%c0_1, %c0_2] : memref<8x128xbf16, #tpu.memory_space<vmem>>, vector<8x128xbf16>
    %cst = arith.constant dense<0.000000e+00> : vector<128x128xf32>
    %2 = tpu.matmul %0, %1, %cst {dimension_numbers = #tpu.dot_dimension_numbers<[1], [0], [0], [1], [0, 0, 1, 1], [], []>} : vector<128x8xbf16>, vector<8x128xbf16>, vector<128x128xf32> -> vector<128x128xf32>
    %c0_3 = arith.constant 0 : index
    %c0_4 = arith.constant 0 : index
    %3 = vector.load %arg3[%c0_3, %c0_4] : memref<1x128xf32, #tpu.memory_space<vmem>>, vector<1x128xf32>
    %4 = vector.broadcast %3 : vector<1x128xf32> to vector<128x128xf32>
    %5 = arith.addf %2, %4 : vector<128x128xf32>
    %6 = arith.truncf %5 : vector<128x128xf32> to vector<128x128xbf16>
    %c0_5 = arith.constant 0 : index
    %c0_6 = arith.constant 0 : index
    %7 = vector.load %arg4[%c0_5, %c0_6] : memref<128x128xbf16, #tpu.memory_space<vmem>>, vector<128x128xbf16>
    tpu.vector_store %arg4[%c0_5, %c0_6], %6 {strides = array<i32>} : memref<128x128xbf16, #tpu.memory_space<vmem>>, vector<128x128xbf16>,
    return
  }
  func.func @transform_0(%arg0: i32) -> (i32, i32) {
    %c0_i32 = arith.constant 0 : i32
    %c0_i32_0 = arith.constant 0 : i32
    return %arg0, %c0_i32 : i32, i32
  }
  func.func @transform_1(%arg0: i32) -> (i32, i32) {
    %c0_i32 = arith.constant 0 : i32
    %c0_i32_0 = arith.constant 0 : i32
    %c0_i32_1 = arith.constant 0 : i32
    return %c0_i32, %c0_i32_0 : i32, i32
  }
  func.func @transform_2(%arg0: i32) -> (i32, i32) {
    %c0_i32 = arith.constant 0 : i32
    %c0_i32_0 = arith.constant 0 : i32
    %c0_i32_1 = arith.constant 0 : i32
    return %c0_i32, %c0_i32_0 : i32, i32
  }
  func.func @transform_3(%arg0: i32) -> (i32, i32) {
    %c0_i32 = arith.constant 0 : i32
    %c0_i32_0 = arith.constant 0 : i32
    return %arg0, %c0_i32 : i32, i32
  }
}

module attributes {stable_mosaic.version = 11 : i64} {
  func.func @_conv_bn_kernel(%arg0: i32, %arg1: i32, %arg2: i32, %arg3: memref<1x1x10x10x8xbf16, #tpu.memory_space<vmem>>, %arg4: memref<3x9x8x4xbf16, #tpu.memory_space<vmem>>, %arg5: memref<1x4xf32, #tpu.memory_space<vmem>>, %arg6: memref<1x1x64x4xf32, #tpu.memory_space<vmem>>, %arg7: memref<1x1x1x4xf32, #tpu.memory_space<vmem>>, %arg8: memref<1x1x1x4xf32, #tpu.memory_space<vmem>>) attributes {dimension_semantics = [#tpu.dimension_semantics<parallel>, #tpu.dimension_semantics<parallel>, #tpu.dimension_semantics<arbitrary>], iteration_bounds = array<i64: 2, 8, 3>, scalar_prefetch = 0 : i64, scratch_operands = 0 : i64, tpu.core_type = #tpu.core_type<tc>, window_params = [{transform_indices = @transform_0, window_bounds = array<i64: 1, 1, 10, 10, 8>}, {pipeline_mode = #tpu.pipeline_mode<synchronous>, transform_indices = @transform_1, window_bounds = array<i64: 3, 9, 8, 4>}, {pipeline_mode = #tpu.pipeline_mode<synchronous>, transform_indices = @transform_2, window_bounds = array<i64: 1, 4>}, {transform_indices = @transform_3, window_bounds = array<i64: 1, 1, 64, 4>}, {transform_indices = @transform_4, window_bounds = array<i64: 1, 1, 1, 4>}, {transform_indices = @transform_5, window_bounds = array<i64: 1, 1, 1, 4>}]} {
    %c0 = arith.constant 0 : index
    %c0_0 = arith.constant 0 : index
    %c0_1 = arith.constant 0 : index
    %c0_2 = arith.constant 0 : index
    %c0_3 = arith.constant 0 : index
    %0 = vector.load %arg3[%c0, %c0_0, %c0_1, %c0_2, %c0_3] : memref<1x1x10x10x8xbf16, #tpu.memory_space<vmem>>, vector<1x1x10x10x8xbf16>
    %1 = vector.shape_cast %0 : vector<1x1x10x10x8xbf16> to vector<10x10x8xbf16>
    %2 = arith.index_cast %arg2 : i32 to index
    %c0_4 = arith.constant 0 : index
    %c0_5 = arith.constant 0 : index
    %c0_6 = arith.constant 0 : index
    %3 = vector.load %arg4[%2, %c0_4, %c0_5, %c0_6] : memref<3x9x8x4xbf16, #tpu.memory_space<vmem>>, vector<1x9x8x4xbf16>
    %4 = vector.shape_cast %3 : vector<1x9x8x4xbf16> to vector<9x8x4xbf16>
    %5 = vector.extract_strided_slice %1 {offsets = [0, 0, 0], sizes = [8, 8, 8], strides = [1, 1, 1]} : vector<10x10x8xbf16> to vector<8x8x8xbf16>
    %6 = vector.shape_cast %5 : vector<8x8x8xbf16> to vector<64x8xbf16>
    %7 = vector.extract_strided_slice %4 {offsets = [0, 0, 0], sizes = [1, 8, 4], strides = [1, 1, 1]} : vector<9x8x4xbf16> to vector<1x8x4xbf16>
    %8 = vector.shape_cast %7 : vector<1x8x4xbf16> to vector<8x4xbf16>
    %cst = arith.constant dense<0.000000e+00> : vector<64x4xf32>
    %9 = tpu.matmul %6, %8, %cst {dimension_numbers = #tpu.dot_dimension_numbers<[1], [0], [0], [1], [0, 0, 1, 1], [], []>} : vector<64x8xbf16>, vector<8x4xbf16>, vector<64x4xf32> -> vector<64x4xf32>
    %10 = vector.extract_strided_slice %1 {offsets = [0, 1, 0], sizes = [8, 8, 8], strides = [1, 1, 1]} : vector<10x10x8xbf16> to vector<8x8x8xbf16>
    %11 = vector.shape_cast %10 : vector<8x8x8xbf16> to vector<64x8xbf16>
    %12 = vector.extract_strided_slice %4 {offsets = [1, 0, 0], sizes = [1, 8, 4], strides = [1, 1, 1]} : vector<9x8x4xbf16> to vector<1x8x4xbf16>
    %13 = vector.shape_cast %12 : vector<1x8x4xbf16> to vector<8x4xbf16>
    %cst_7 = arith.constant dense<0.000000e+00> : vector<64x4xf32>
    %14 = tpu.matmul %11, %13, %cst_7 {dimension_numbers = #tpu.dot_dimension_numbers<[1], [0], [0], [1], [0, 0, 1, 1], [], []>} : vector<64x8xbf16>, vector<8x4xbf16>, vector<64x4xf32> -> vector<64x4xf32>
    %15 = arith.addf %9, %14 : vector<64x4xf32>
    %16 = vector.extract_strided_slice %1 {offsets = [0, 2, 0], sizes = [8, 8, 8], strides = [1, 1, 1]} : vector<10x10x8xbf16> to vector<8x8x8xbf16>
    %17 = vector.shape_cast %16 : vector<8x8x8xbf16> to vector<64x8xbf16>
    %18 = vector.extract_strided_slice %4 {offsets = [2, 0, 0], sizes = [1, 8, 4], strides = [1, 1, 1]} : vector<9x8x4xbf16> to vector<1x8x4xbf16>
    %19 = vector.shape_cast %18 : vector<1x8x4xbf16> to vector<8x4xbf16>
    %cst_8 = arith.constant dense<0.000000e+00> : vector<64x4xf32>
    %20 = tpu.matmul %17, %19, %cst_8 {dimension_numbers = #tpu.dot_dimension_numbers<[1], [0], [0], [1], [0, 0, 1, 1], [], []>} : vector<64x8xbf16>, vector<8x4xbf16>, vector<64x4xf32> -> vector<64x4xf32>
    %21 = arith.addf %15, %20 : vector<64x4xf32>
    %22 = vector.extract_strided_slice %1 {offsets = [1, 0, 0], sizes = [8, 8, 8], strides = [1, 1, 1]} : vector<10x10x8xbf16> to vector<8x8x8xbf16>
    %23 = vector.shape_cast %22 : vector<8x8x8xbf16> to vector<64x8xbf16>
    %24 = vector.extract_strided_slice %4 {offsets = [3, 0, 0], sizes = [1, 8, 4], strides = [1, 1, 1]} : vector<9x8x4xbf16> to vector<1x8x4xbf16>
    %25 = vector.shape_cast %24 : vector<1x8x4xbf16> to vector<8x4xbf16>
    %cst_9 = arith.constant dense<0.000000e+00> : vector<64x4xf32>
    %26 = tpu.matmul %23, %25, %cst_9 {dimension_numbers = #tpu.dot_dimension_numbers<[1], [0], [0], [1], [0, 0, 1, 1], [], []>} : vector<64x8xbf16>, vector<8x4xbf16>, vector<64x4xf32> -> vector<64x4xf32>
    %27 = arith.addf %21, %26 : vector<64x4xf32>
    %28 = vector.extract_strided_slice %1 {offsets = [1, 1, 0], sizes = [8, 8, 8], strides = [1, 1, 1]} : vector<10x10x8xbf16> to vector<8x8x8xbf16>
    %29 = vector.shape_cast %28 : vector<8x8x8xbf16> to vector<64x8xbf16>
    %30 = vector.extract_strided_slice %4 {offsets = [4, 0, 0], sizes = [1, 8, 4], strides = [1, 1, 1]} : vector<9x8x4xbf16> to vector<1x8x4xbf16>
    %31 = vector.shape_cast %30 : vector<1x8x4xbf16> to vector<8x4xbf16>
    %cst_10 = arith.constant dense<0.000000e+00> : vector<64x4xf32>
    %32 = tpu.matmul %29, %31, %cst_10 {dimension_numbers = #tpu.dot_dimension_numbers<[1], [0], [0], [1], [0, 0, 1, 1], [], []>} : vector<64x8xbf16>, vector<8x4xbf16>, vector<64x4xf32> -> vector<64x4xf32>
    %33 = arith.addf %27, %32 : vector<64x4xf32>
    %34 = vector.extract_strided_slice %1 {offsets = [1, 2, 0], sizes = [8, 8, 8], strides = [1, 1, 1]} : vector<10x10x8xbf16> to vector<8x8x8xbf16>
    %35 = vector.shape_cast %34 : vector<8x8x8xbf16> to vector<64x8xbf16>
    %36 = vector.extract_strided_slice %4 {offsets = [5, 0, 0], sizes = [1, 8, 4], strides = [1, 1, 1]} : vector<9x8x4xbf16> to vector<1x8x4xbf16>
    %37 = vector.shape_cast %36 : vector<1x8x4xbf16> to vector<8x4xbf16>
    %cst_11 = arith.constant dense<0.000000e+00> : vector<64x4xf32>
    %38 = tpu.matmul %35, %37, %cst_11 {dimension_numbers = #tpu.dot_dimension_numbers<[1], [0], [0], [1], [0, 0, 1, 1], [], []>} : vector<64x8xbf16>, vector<8x4xbf16>, vector<64x4xf32> -> vector<64x4xf32>
    %39 = arith.addf %33, %38 : vector<64x4xf32>
    %40 = vector.extract_strided_slice %1 {offsets = [2, 0, 0], sizes = [8, 8, 8], strides = [1, 1, 1]} : vector<10x10x8xbf16> to vector<8x8x8xbf16>
    %41 = vector.shape_cast %40 : vector<8x8x8xbf16> to vector<64x8xbf16>
    %42 = vector.extract_strided_slice %4 {offsets = [6, 0, 0], sizes = [1, 8, 4], strides = [1, 1, 1]} : vector<9x8x4xbf16> to vector<1x8x4xbf16>
    %43 = vector.shape_cast %42 : vector<1x8x4xbf16> to vector<8x4xbf16>
    %cst_12 = arith.constant dense<0.000000e+00> : vector<64x4xf32>
    %44 = tpu.matmul %41, %43, %cst_12 {dimension_numbers = #tpu.dot_dimension_numbers<[1], [0], [0], [1], [0, 0, 1, 1], [], []>} : vector<64x8xbf16>, vector<8x4xbf16>, vector<64x4xf32> -> vector<64x4xf32>
    %45 = arith.addf %39, %44 : vector<64x4xf32>
    %46 = vector.extract_strided_slice %1 {offsets = [2, 1, 0], sizes = [8, 8, 8], strides = [1, 1, 1]} : vector<10x10x8xbf16> to vector<8x8x8xbf16>
    %47 = vector.shape_cast %46 : vector<8x8x8xbf16> to vector<64x8xbf16>
    %48 = vector.extract_strided_slice %4 {offsets = [7, 0, 0], sizes = [1, 8, 4], strides = [1, 1, 1]} : vector<9x8x4xbf16> to vector<1x8x4xbf16>
    %49 = vector.shape_cast %48 : vector<1x8x4xbf16> to vector<8x4xbf16>
    %cst_13 = arith.constant dense<0.000000e+00> : vector<64x4xf32>
    %50 = tpu.matmul %47, %49, %cst_13 {dimension_numbers = #tpu.dot_dimension_numbers<[1], [0], [0], [1], [0, 0, 1, 1], [], []>} : vector<64x8xbf16>, vector<8x4xbf16>, vector<64x4xf32> -> vector<64x4xf32>
    %51 = arith.addf %45, %50 : vector<64x4xf32>
    %52 = vector.extract_strided_slice %1 {offsets = [2, 2, 0], sizes = [8, 8, 8], strides = [1, 1, 1]} : vector<10x10x8xbf16> to vector<8x8x8xbf16>
    %53 = vector.shape_cast %52 : vector<8x8x8xbf16> to vector<64x8xbf16>
    %54 = vector.extract_strided_slice %4 {offsets = [8, 0, 0], sizes = [1, 8, 4], strides = [1, 1, 1]} : vector<9x8x4xbf16> to vector<1x8x4xbf16>
    %55 = vector.shape_cast %54 : vector<1x8x4xbf16> to vector<8x4xbf16>
    %cst_14 = arith.constant dense<0.000000e+00> : vector<64x4xf32>
    %56 = tpu.matmul %53, %55, %cst_14 {dimension_numbers = #tpu.dot_dimension_numbers<[1], [0], [0], [1], [0, 0, 1, 1], [], []>} : vector<64x8xbf16>, vector<8x4xbf16>, vector<64x4xf32> -> vector<64x4xf32>
    %57 = arith.addf %51, %56 : vector<64x4xf32>
    %c0_i32 = arith.constant 0 : i32
    %58 = arith.cmpi eq, %arg2, %c0_i32 : i32
    %59 = arith.extui %58 : i1 to i32
    %c0_i32_15 = arith.constant 0 : i32
    %60 = arith.cmpi ne, %59, %c0_i32_15 : i32
    scf.if %60 {
      %c0_19 = arith.constant 0 : index
      %c0_20 = arith.constant 0 : index
      %67 = vector.load %arg5[%c0_19, %c0_20] : memref<1x4xf32, #tpu.memory_space<vmem>>, vector<1x4xf32>
      %68 = vector.broadcast %67 : vector<1x4xf32> to vector<64x4xf32>
      %69 = arith.addf %57, %68 : vector<64x4xf32>
      %c0_21 = arith.constant 0 : index
      %c0_22 = arith.constant 0 : index
      %c0_23 = arith.constant 0 : index
      %c0_24 = arith.constant 0 : index
      %70 = vector.load %arg6[%c0_21, %c0_22, %c0_23, %c0_24] : memref<1x1x64x4xf32, #tpu.memory_space<vmem>>, vector<1x1x64x4xf32>
      %71 = vector.shape_cast %70 : vector<1x1x64x4xf32> to vector<64x4xf32>
      %72 = vector.shape_cast %69 : vector<64x4xf32> to vector<1x1x64x4xf32>
      tpu.vector_store %arg6[%c0_21, %c0_22, %c0_23, %c0_24], %72 {strides = array<i32>} : memref<1x1x64x4xf32, #tpu.memory_space<vmem>>, vector<1x1x64x4xf32>,
    } else {
    }
    %c0_i32_16 = arith.constant 0 : i32
    %61 = arith.cmpi sgt, %arg2, %c0_i32_16 : i32
    %62 = arith.extui %61 : i1 to i32
    %c0_i32_17 = arith.constant 0 : i32
    %63 = arith.cmpi ne, %62, %c0_i32_17 : i32
    scf.if %63 {
      %c0_19 = arith.constant 0 : index
      %c0_20 = arith.constant 0 : index
      %c0_21 = arith.constant 0 : index
      %c0_22 = arith.constant 0 : index
      %67 = vector.load %arg6[%c0_19, %c0_20, %c0_21, %c0_22] : memref<1x1x64x4xf32, #tpu.memory_space<vmem>>, vector<1x1x64x4xf32>
      %68 = vector.shape_cast %67 : vector<1x1x64x4xf32> to vector<64x4xf32>
      %69 = arith.addf %68, %57 : vector<64x4xf32>
      %c0_23 = arith.constant 0 : index
      %c0_24 = arith.constant 0 : index
      %c0_25 = arith.constant 0 : index
      %c0_26 = arith.constant 0 : index
      %70 = vector.load %arg6[%c0_23, %c0_24, %c0_25, %c0_26] : memref<1x1x64x4xf32, #tpu.memory_space<vmem>>, vector<1x1x64x4xf32>
      %71 = vector.shape_cast %70 : vector<1x1x64x4xf32> to vector<64x4xf32>
      %72 = vector.shape_cast %69 : vector<64x4xf32> to vector<1x1x64x4xf32>
      tpu.vector_store %arg6[%c0_23, %c0_24, %c0_25, %c0_26], %72 {strides = array<i32>} : memref<1x1x64x4xf32, #tpu.memory_space<vmem>>, vector<1x1x64x4xf32>,
    } else {
    }
    %c2_i32 = arith.constant 2 : i32
    %64 = arith.cmpi eq, %arg2, %c2_i32 : i32
    %65 = arith.extui %64 : i1 to i32
    %c0_i32_18 = arith.constant 0 : i32
    %66 = arith.cmpi ne, %65, %c0_i32_18 : i32
    scf.if %66 {
      %c0_19 = arith.constant 0 : index
      %c0_20 = arith.constant 0 : index
      %c0_21 = arith.constant 0 : index
      %c0_22 = arith.constant 0 : index
      %67 = vector.load %arg6[%c0_19, %c0_20, %c0_21, %c0_22] : memref<1x1x64x4xf32, #tpu.memory_space<vmem>>, vector<1x1x64x4xf32>
      %68 = vector.shape_cast %67 : vector<1x1x64x4xf32> to vector<64x4xf32>
      %cst_23 = arith.constant dense<0.000000e+00> : vector<4xf32>
      %69 = vector.multi_reduction <add>, %68, %cst_23 [0] : vector<64x4xf32> to vector<4xf32>
      %70 = vector.shape_cast %69 : vector<4xf32> to vector<1x4xf32>
      %c0_24 = arith.constant 0 : index
      %c0_25 = arith.constant 0 : index
      %c0_26 = arith.constant 0 : index
      %c0_27 = arith.constant 0 : index
      %71 = vector.load %arg7[%c0_24, %c0_25, %c0_26, %c0_27] : memref<1x1x1x4xf32, #tpu.memory_space<vmem>>, vector<1x1x1x4xf32>
      %72 = vector.shape_cast %71 : vector<1x1x1x4xf32> to vector<1x4xf32>
      %73 = vector.shape_cast %70 : vector<1x4xf32> to vector<1x1x1x4xf32>
      tpu.vector_store %arg7[%c0_24, %c0_25, %c0_26, %c0_27], %73 {strides = array<i32>} : memref<1x1x1x4xf32, #tpu.memory_space<vmem>>, vector<1x1x1x4xf32>,
      %74 = arith.mulf %68, %68 : vector<64x4xf32>
      %cst_28 = arith.constant dense<0.000000e+00> : vector<4xf32>
      %75 = vector.multi_reduction <add>, %74, %cst_28 [0] : vector<64x4xf32> to vector<4xf32>
      %76 = vector.shape_cast %75 : vector<4xf32> to vector<1x4xf32>
      %c0_29 = arith.constant 0 : index
      %c0_30 = arith.constant 0 : index
      %c0_31 = arith.constant 0 : index
      %c0_32 = arith.constant 0 : index
      %77 = vector.load %arg8[%c0_29, %c0_30, %c0_31, %c0_32] : memref<1x1x1x4xf32, #tpu.memory_space<vmem>>, vector<1x1x1x4xf32>
      %78 = vector.shape_cast %77 : vector<1x1x1x4xf32> to vector<1x4xf32>
      %79 = vector.shape_cast %76 : vector<1x4xf32> to vector<1x1x1x4xf32>
      tpu.vector_store %arg8[%c0_29, %c0_30, %c0_31, %c0_32], %79 {strides = array<i32>} : memref<1x1x1x4xf32, #tpu.memory_space<vmem>>, vector<1x1x1x4xf32>,
    } else {
    }
    return
  }
  func.func @transform_0(%arg0: i32, %arg1: i32, %arg2: i32) -> (i32, i32, i32, i32, i32) {
    %0 = arith.addi %arg1, %arg2 : i32
    %c0_i32 = arith.constant 0 : i32
    %c0_i32_0 = arith.constant 0 : i32
    %c0_i32_1 = arith.constant 0 : i32
    %c0_i32_2 = arith.constant 0 : i32
    return %arg0, %0, %c0_i32, %c0_i32_0, %c0_i32_1 : i32, i32, i32, i32, i32
  }
  func.func @transform_1(%arg0: i32, %arg1: i32, %arg2: i32) -> (i32, i32, i32, i32) {
    %c0_i32 = arith.constant 0 : i32
    %c0_i32_0 = arith.constant 0 : i32
    %c0_i32_1 = arith.constant 0 : i32
    %c0_i32_2 = arith.constant 0 : i32
    %c0_i32_3 = arith.constant 0 : i32
    return %c0_i32, %c0_i32_0, %c0_i32_1, %c0_i32_2 : i32, i32, i32, i32
  }
  func.func @transform_2(%arg0: i32, %arg1: i32, %arg2: i32) -> (i32, i32) {
    %c0_i32 = arith.constant 0 : i32
    %c0_i32_0 = arith.constant 0 : i32
    %c0_i32_1 = arith.constant 0 : i32
    return %c0_i32, %c0_i32_0 : i32, i32
  }
  func.func @transform_3(%arg0: i32, %arg1: i32, %arg2: i32) -> (i32, i32, i32, i32) {
    %c0_i32 = arith.constant 0 : i32
    %c0_i32_0 = arith.constant 0 : i32
    %c0_i32_1 = arith.constant 0 : i32
    return %arg0, %arg1, %c0_i32, %c0_i32_0 : i32, i32, i32, i32
  }
  func.func @transform_4(%arg0: i32, %arg1: i32, %arg2: i32) -> (i32, i32, i32, i32) {
    %c0_i32 = arith.constant 0 : i32
    %c0_i32_0 = arith.constant 0 : i32
    %c0_i32_1 = arith.constant 0 : i32
    return %arg0, %arg1, %c0_i32, %c0_i32_0 : i32, i32, i32, i32
  }
  func.func @transform_5(%arg0: i32, %arg1: i32, %arg2: i32) -> (i32, i32, i32, i32) {
    %c0_i32 = arith.constant 0 : i32
    %c0_i32_0 = arith.constant 0 : i32
    %c0_i32_1 = arith.constant 0 : i32
    return %arg0, %arg1, %c0_i32, %c0_i32_0 : i32, i32, i32, i32
  }
}

module attributes {stable_mosaic.version = 11 : i64} {
  func.func @_affine_relu_kernel(%arg0: i32, %arg1: memref<8x1024xf32, #tpu.memory_space<vmem>>, %arg2: memref<1x1024xf32, #tpu.memory_space<vmem>>, %arg3: memref<1x1024xf32, #tpu.memory_space<vmem>>, %arg4: memref<8x1024xf32, #tpu.memory_space<vmem>>) attributes {dimension_semantics = [#tpu.dimension_semantics<parallel>], iteration_bounds = array<i64: 1>, scalar_prefetch = 0 : i64, scratch_operands = 0 : i64, tpu.core_type = #tpu.core_type<tc>, window_params = [{transform_indices = @transform_0, window_bounds = array<i64: 8, 1024>}, {pipeline_mode = #tpu.pipeline_mode<synchronous>, transform_indices = @transform_1, window_bounds = array<i64: 1, 1024>}, {pipeline_mode = #tpu.pipeline_mode<synchronous>, transform_indices = @transform_2, window_bounds = array<i64: 1, 1024>}, {transform_indices = @transform_3, window_bounds = array<i64: 8, 1024>}]} {
    %c0 = arith.constant 0 : index
    %c0_0 = arith.constant 0 : index
    %0 = vector.load %arg1[%c0, %c0_0] : memref<8x1024xf32, #tpu.memory_space<vmem>>, vector<8x1024xf32>
    %c0_1 = arith.constant 0 : index
    %c0_2 = arith.constant 0 : index
    %1 = vector.load %arg2[%c0_1, %c0_2] : memref<1x1024xf32, #tpu.memory_space<vmem>>, vector<1x1024xf32>
    %2 = vector.broadcast %1 : vector<1x1024xf32> to vector<8x1024xf32>
    %3 = arith.mulf %0, %2 : vector<8x1024xf32>
    %c0_3 = arith.constant 0 : index
    %c0_4 = arith.constant 0 : index
    %4 = vector.load %arg3[%c0_3, %c0_4] : memref<1x1024xf32, #tpu.memory_space<vmem>>, vector<1x1024xf32>
    %5 = vector.broadcast %4 : vector<1x1024xf32> to vector<8x1024xf32>
    %6 = arith.addf %3, %5 : vector<8x1024xf32>
    %cst = arith.constant 0.000000e+00 : f32
    %7 = vector.broadcast %cst : f32 to vector<8x1024xf32>
    %8 = arith.maximumf %6, %7 : vector<8x1024xf32>
    %c0_5 = arith.constant 0 : index
    %c0_6 = arith.constant 0 : index
    %9 = vector.load %arg4[%c0_5, %c0_6] : memref<8x1024xf32, #tpu.memory_space<vmem>>, vector<8x1024xf32>
    tpu.vector_store %arg4[%c0_5, %c0_6], %8 {strides = array<i32>} : memref<8x1024xf32, #tpu.memory_space<vmem>>, vector<8x1024xf32>,
    return
  }
  func.func @transform_0(%arg0: i32) -> (i32, i32) {
    %c0_i32 = arith.constant 0 : i32
    %c0_i32_0 = arith.constant 0 : i32
    return %arg0, %c0_i32 : i32, i32
  }
  func.func @transform_1(%arg0: i32) -> (i32, i32) {
    %c0_i32 = arith.constant 0 : i32
    %c0_i32_0 = arith.constant 0 : i32
    %c0_i32_1 = arith.constant 0 : i32
    return %c0_i32, %c0_i32_0 : i32, i32
  }
  func.func @transform_2(%arg0: i32) -> (i32, i32) {
    %c0_i32 = arith.constant 0 : i32
    %c0_i32_0 = arith.constant 0 : i32
    %c0_i32_1 = arith.constant 0 : i32
    return %c0_i32, %c0_i32_0 : i32, i32
  }
  func.func @transform_3(%arg0: i32) -> (i32, i32) {
    %c0_i32 = arith.constant 0 : i32
    %c0_i32_0 = arith.constant 0 : i32
    return %arg0, %c0_i32 : i32, i32
  }
}

</mosaic_0001>

<bundles_post_ra>
// kernel: decoder_forward.3
= control target key start
LH: loop header
LB: loop body
LE: loop exit
PB: predicated region body
PF: predicated region fallthrough
CT: control target
= control target key end

     0   :  { %vm101_vm0 = vcmask 1043456   ;;  %vm76_vm1 = vcmask 64512   ;;  %s371_s1 = inlined_call_operand.vmem [shape: bf16[8,128], index: 1, kind: input, shape index: {}]   ;;  %s372_s0 = inlined_call_operand.vmem [shape: bf16[128,8], index: 0, kind: input, shape index: {}]   ;;  %s373_s2 = inlined_call_operand.vmem [shape: f32[1,128], index: 2, kind: input, shape index: {}]   ;;  %s374_s3 = inlined_call_operand.vmem [shape: bf16[128,128], index: 3, kind: output, shape index: {}]  }
   0x1   :  { %v31_v0 = vld [vmem:[%s371_s1] sm:$0xf]  ;;  %v232_v3 = vld [vmem:[%s372_s0 + $0x10] sm:$0xff]  ;;  %v231_v6 = vld [vmem:[%s372_s0 + $0x8] sm:$0xff] }
   0x2   :  { %v103_v1 = vsel %vm101_vm0, %v31_v0, 0  ;;  %v230_v2 = vld [vmem:[%s372_s0] sm:$0xff]  ;;  %v236_v5 = vld [vmem:[%s372_s0 + $0x30] sm:$0xff]  ;;  %v233_v7 = vld [vmem:[%s372_s0 + $0x18] sm:$0xff] }
   0x3   :  { %112 = vmatpush.bf16.msra.mxu0 %v103_v1  ;;  %285 = vmatpush.bf16.msra.mxu1 %v103_v1  ;;  %v234_v4 = vld [vmem:[%s372_s0 + $0x20] sm:$0xff]  ;;  %v235_v8 = vld [vmem:[%s372_s0 + $0x28] sm:$0xff]  ;;  %v237_v9 = vld [vmem:[%s372_s0 + $0x38] sm:$0xff] }
   0x4   :  { %286 = vmatpush.bf16.msra.mxu2 %v103_v1  ;;  %287 = vmatpush.bf16.msra.mxu3 %v103_v1  ;;  %v288_v12 = vld [vmem:[%s373_s2] ss:$0 sm:$0xff] }
   0x6   :  { %222 = vmatmul.msk.bf16.vlgmr.msra.gmra.mxu0 %vm76_vm1, %v230_v2  ;;  %224 = vmatmul.msk.bf16.vlgmr.msra.gmra.mxu1 %vm76_vm1, %v232_v3 }
   0x7   :  { %226 = vmatmul.msk.bf16.vlgmr.msra.gmra.mxu2 %vm76_vm1, %v234_v4  ;;  %228 = vmatmul.msk.bf16.vlgmr.msra.gmra.mxu3 %vm76_vm1, %v236_v5 }
  0x16   :  { %223 = vmatmul.msk.bf16.gmra.mxu0 %vm76_vm1, %v231_v6  ;;  %225 = vmatmul.msk.bf16.gmra.mxu1 %vm76_vm1, %v233_v7 }
  0x17   :  { %227 = vmatmul.msk.bf16.gmra.mxu2 %vm76_vm1, %v235_v8  ;;  %229 = vmatmul.msk.bf16.gmra.mxu3 %vm76_vm1, %v237_v9 }
  0x83   :  { %v114_v10 = vpop.f32.mrf.mxu0  ;;  %v124_v11 = vpop.f32.mrf.mxu1 }
  0x84   :  { %v115_v17 = vadd.f32 %v288_v12, %v114_v10  ;;  %v125_v18 = vadd.f32 %v288_v12, %v124_v11 }
  0x8a   :  { %v134_v13 = vpop.f32.mrf.mxu2  ;;  %v144_v14 = vpop.f32.mrf.mxu3 }
  0x8b   :  { %v116_v15 = vpop.f32.mrf.mxu0  ;;  %v126_v16 = vpop.f32.mrf.mxu1  ;;  %v135_v25 = vadd.f32 %v288_v12, %v134_v13  ;;  %v145_v26 = vadd.f32 %v288_v12, %v144_v14 }
  0x8c   :  { %v117_v19 = vadd.f32 %v288_v12, %v116_v15  ;;  %v127_v20 = vadd.f32 %v288_v12, %v126_v16 }
  0x8e   :  { %v241_v21 = vpack.c.bf16 %v117_v19, %v115_v17  ;;  %v251_v22 = vpack.c.bf16 %v127_v20, %v125_v18 }
  0x90   :  { %242 = vst [vmem:[%s374_s3] sm:$0xff] %v241_v21  }
  0x91   :  { %279 = vst [vmem:[%s374_s3 + $0x10] sm:$0xff] %v251_v22  }
  0x92   :  { %v136_v23 = vpop.f32.mrf.mxu2  ;;  %v146_v24 = vpop.f32.mrf.mxu3 }
  0x93   :  { %v137_v27 = vadd.f32 %v288_v12, %v136_v23  ;;  %v147_v28 = vadd.f32 %v288_v12, %v146_v24  ;;  %v119_v29 = vpop.f32.mrf.mxu0  ;;  %v129_v30 = vpop.f32.mrf.mxu1 }
  0x94   :  { %v120_v37 = vadd.f32 %v288_v12, %v119_v29  ;;  %v130_v38 = vadd.f32 %v288_v12, %v129_v30 }
  0x95   :  { %v261_v31 = vpack.c.bf16 %v137_v27, %v135_v25  ;;  %v271_v32 = vpack.c.bf16 %v147_v28, %v145_v26 }
  0x97   :  { %281 = vst [vmem:[%s374_s3 + $0x20] sm:$0xff] %v261_v31  }
  0x98   :  { %283 = vst [vmem:[%s374_s3 + $0x30] sm:$0xff] %v271_v32  }
  0x9a   :  { %v139_v33 = vpop.f32.mrf.mxu2  ;;  %v149_v34 = vpop.f32.mrf.mxu3 }
  0x9b   :  { %v121_v35 = vpop.f32.mrf.mxu0  ;;  %v131_v36 = vpop.f32.mrf.mxu1  ;;  %v140_v45 = vadd.f32 %v288_v12, %v139_v33  ;;  %v150_v46 = vadd.f32 %v288_v12, %v149_v34 }
  0x9c   :  { %v122_v39 = vadd.f32 %v288_v12, %v121_v35  ;;  %v132_v40 = vadd.f32 %v288_v12, %v131_v36 }
  0x9e   :  { %v246_v41 = vpack.c.bf16 %v122_v39, %v120_v37  ;;  %v256_v42 = vpack.c.bf16 %v132_v40, %v130_v38 }
  0xa0   :  { %278 = vst [vmem:[%s374_s3 + $0x8] sm:$0xff] %v246_v41  }
  0xa1   :  { %280 = vst [vmem:[%s374_s3 + $0x18] sm:$0xff] %v256_v42  }
  0xa2   :  { %v141_v43 = vpop.f32.mrf.mxu2  ;;  %v151_v44 = vpop.f32.mrf.mxu3 }
  0xa3   :  { %v142_v47 = vadd.f32 %v288_v12, %v141_v43  ;;  %v152_v48 = vadd.f32 %v288_v12, %v151_v44 }
  0xa5   :  { %v266_v49 = vpack.c.bf16 %v142_v47, %v140_v45  ;;  %v276_v50 = vpack.c.bf16 %v152_v48, %v150_v46 }
  0xa7   :  { %282 = vst [vmem:[%s374_s3 + $0x28] sm:$0xff] %v266_v49  }
  0xa8   :  { %284 = vst [vmem:[%s374_s3 + $0x38] sm:$0xff] %v276_v50  }

// kernel: decoder_forward.4
= control target key start
LH: loop header
LB: loop body
LE: loop exit
PB: predicated region body
PF: predicated region fallthrough
CT: control target
= control target key end

     0   :  { %s1552_s18 = smov 0   ;;  %s1554_s19 = smov 0   ;;  %s2020_s0 = inlined_call_operand.vmem [shape: bf16[2,10,10,10,8], index: 0, kind: input, shape index: {}]   ;;  %s2021_s1 = inlined_call_operand.vmem [shape: bf16[3,9,8,4], index: 1, kind: input, shape index: {}]   ;;  %s2022_s2 = inlined_call_operand.vmem [shape: f32[1,4], index: 2, kind: input, shape index: {}]   ;;  %s2023_s3 = inlined_call_operand.vmem [shape: f32[2,8,64,4], index: 3, kind: output, shape index: {0}]   ;;  %s2024_s4 = inlined_call_operand.vmem [shape: f32[2,8,1,4], index: 4, kind: output, shape index: {1}]   ;;  %s2025_s5 = inlined_call_operand.vmem [shape: f32[2,8,1,4], index: 5, kind: output, shape index: {2}]  }
   0x1   :  { %s1556_s20 = smov 0   ;;  %s1558_s21 = smov 0  }
   0x2   :  { %s1560_s22 = smov 0   ;;  %s1562_s23 = smov 0  }
   0x3   :  { %s1564_s24 = smov 0  }
   0x4 LB: > { %s28_s25 = sadd.s32 1, %s1508_s21  ;;  %s31_s26 = sadd.s32 1, %s1512_s22  ;;  %s1520_s24 = sphi %s1564_s24, %s16_s24   ;;  %s1516_s23 = sphi %s1562_s23, %s2035_s23   ;;  %s1512_s22 = sphi %s1560_s22, %s2034_s22   ;;  %s1508_s21 = sphi %s1558_s21, %s2033_s21   ;;  %s1504_s20 = sphi %s1556_s20, %s2032_s20   ;;  %s1500_s19 = sphi %s1554_s19, %s2031_s19   ;;  %s1496_s18 = sphi %s1552_s18, %s2030_s18  }
   0x5   : > { %p29_p0 = scmp.ge.s32.totalorder %s28_s25, 3  ;;  %p1344_p1 = scmp.ge.s32.totalorder %s1520_s24, 1 }
   0x6   : > { %p227_p2 = scmp.lt.s32.totalorder %s1520_s24, 49  ;;  %s35_s27 = sadd.s32 1, %s1516_s23 }
   0x7   : > { %s2037_s25 = smov (%p29_p0, %s28_s25), 0  ;;  %s2039_s26 = smov (!%p29_p0, %s31_s26), %s1512_s22 }
   0x8   : > { %p228_p3 = pnand %p1344_p1, %p227_p2  ;;  %p33_p4 = scmp.ge.s32.totalorder %s2039_s26, 8 }
   0x9   : > { %s1403_s28 = smul.u32 (!%p228_p3), 36, %s1496_s18  ;;  %s278_s29 = sadd.s32 (!%p228_p3), %s1496_s18, %s1500_s19 }
   0xa   : > { %s2041_s26 = smov (%p33_p4, %s2039_s26), 0  ;;  %s2043_s27 = smov (!%p33_p4, %s35_s27), %s1516_s23 }
   0xb   : > { %p37_p5 = scmp.ge.s32.totalorder %s2043_s27, 2  ;;  %231 = sbr.rel (%p228_p3) target bundleno = 387 (0x183), region = 32 }
   0xc   : > { %p279_p6 = scmp.lt.s32.totalorder (!%p228_p3), %s1504_s20, 1  ;;  %p281_p7 = scmp.lt.s32.totalorder (!%p228_p3), %s278_s29, 9 }
   0xd   : > { %s2045_s27 = smov (%p37_p5, %s2043_s27), 0  ;;  %s1604_s7 = scalar_lea.vmem (!%p228_p3), %s2021_s1, %s1403_s28 }
   0xe   : > { %p291_p8 = scmp.lt.s32.totalorder (!%p228_p3), %s1500_s19, 7  ;;  %p1398_p9 = scmp.ne.s32.totalorder (!%p228_p3), %s1496_s18, 0 }
  0x10   : > { %vm485_vm0 = vcmask 1043456   ;;  %v337_v0 = vld [vmem:[%s1604_s7 + $0x4] sm:$0xf]  ;;  %s2047_s20 = smov (!%p279_p6, %s1504_s20), 1  ;;  %s2049_s29 = smov (!%p281_p7, %s278_s29), 9  ;;  %vm472_vm3 = vcmask 64512  }
  0x11   : > { %v487_v1 = vsel %vm485_vm0, %v337_v0, 0  ;;  %v338_v2 = vld [vmem:[%s1604_s7 + $0x8] sm:$0xf]  ;;  %s1408_s8 = smul.u32 200, %s2047_s20  ;;  %s1347_s10 = sshll.u32 %s2047_s20, 6  ;;  %vm590_vm5 = vcmask 1042432  }
  0x12   : > { %1404 = vmatpush.bf16.msra.mxu1 %v487_v1  ;;  %1405 = vmatpush.bf16.msra.mxu2 %v487_v1  ;;  %v650_v3 = vsel %vm485_vm0, %v338_v2, 0  ;;  %s1407_s9 = smul.u32 20, %s2049_s29  ;;  %s2051_s19 = smov (!%p291_p8, %s1500_s19), 7  ;;  %vm345_vm1 = vsmask.f32 3328  ;;  %vm591_vm6 = vcmask 1046532  }
  0x13   : > { %1406 = vmatpush.bf16.msra.mxu3 %v487_v1  ;;  %496 = vmatpush.bf16.msra.mxu0 %v487_v1  ;;  %s1349_s12 = sshll.u32 %s2047_s20, 3  ;;  %s1346_s14 = sshll.u32 %s2051_s19, 3  ;;  %v339_v4 = vld [vmem:[%s1604_s7 + $0xc] sm:$0xf]  ;;  %v336_v5 = vld [vmem:[%s1604_s7] sm:$0xf]  ;;  %vm1755_vm7 = vmor %vm590_vm5, %vm591_vm6 }
  0x14   : > { %s285_s11 = sadd.s32 %s1408_s8, %s1407_s9  ;;  %s295_s28 = sadd.s32 %s1347_s10, %s1346_s14  ;;  %vm346_vm2 = vsmask.f32 7440  ;;  %v708_v6 = vsel %vm485_vm0, %v339_v4, 0  ;;  %v551_v7 = vsel %vm485_vm0, %v336_v5, 0  ;;  %v340_v8 = vld [vmem:[%s1604_s7 + $0x10] sm:$0xf] }
  0x15   : > { %s1345_s13 = sshll.u32 %s285_s11, 2  ;;  %s1348_s20 = sshll.u32 %s295_s28, 3  ;;  %v779_v11 = vsel %vm485_vm0, %v340_v8, 0  ;;  %vm1680_vm4 = vmor %vm345_vm1, %vm346_vm2 }
  0x16   : > { %659 = vmatpush.bf16.msrb.mxu2 %v650_v3  ;;  %s1624_s17 = scalar_lea.vmem %s2020_s0, %s1345_s13  ;;  %s1629_s29 = sadd.s32 %s1349_s12, %s2051_s19  ;;  %560 = vmatpush.bf16.msrb.mxu1 %v551_v7 }
  0x17   : > { %v1632_v9 = vld [vmem:[%s1624_s17 + $0x10] sm:$0xf]  ;;  %v1635_v10 = vld [vmem:[%s1624_s17 + $0x14] sm:$0x1]  ;;  %717 = vmatpush.bf16.msrb.mxu3 %v708_v6  ;;  %s1641_s8 = scalar_lea.vmem %s2023_s3, %s1348_s20  ;;  %s304_s10 = scalar_lea.vmem %s2024_s4, %s1629_s29  ;;  %v1648_v12 = vld [vmem:[%s1624_s17 + $0x18] sm:$0xf]  ;;  %788 = vmatpush.bf16.msrb.mxu0 %v779_v11 }
  0x18   : > { %v1651_v13 = vld [vmem:[%s1624_s17 + $0x1c] sm:$0x1]  ;;  %v377_v14 = vshrl.u32 %v1632_v9, 16  ;;  %v380_v15 = vshll.u32 %v1632_v9, 16  ;;  %s311_s13 = scalar_lea.vmem %s2025_s5, %s1629_s29  ;;  %v386_v16 = vshll.u32 %v1635_v10, 16  ;;  %v391_v17 = vshrl.u32 %v1648_v12, 16 }
  0x19   : > { %v394_v18 = vshll.u32 %v1648_v12, 16  ;;  %v400_v19 = vshll.u32 %v1651_v13, 16  ;;  %v1664_v20 = vld [vmem:[%s1624_s17 + $0x20] sm:$0xf]  ;;  %v1667_v23 = vld [vmem:[%s1624_s17 + $0x24] sm:$0x1] }
  0x1a   : > { %v379_v21 = vrot.slane %v377_v14, 4  ;;  %v382_v22 = vrot.slane %v380_v15, 5  ;;  %v1670_v24 = vld [vmem:[%s1624_s17 + $0x28] sm:$0xf]  ;;  %v388_v25 = vrot.slane %v386_v16, 5  ;;  %v393_v26 = vrot.slane %v391_v17, 4 }
  0x1b   : > { %v396_v27 = vrot.slane %v394_v18, 5  ;;  %v402_v28 = vrot.slane %v400_v19, 5  ;;  %v1673_v29 = vld [vmem:[%s1624_s17 + $0x2c] sm:$0x1]  ;;  %v405_v31 = vshrl.u32 %v1664_v20, 16  ;;  %v408_v32 = vshll.u32 %v1664_v20, 16 }
  0x1c   : > { %v383_v30 = vor.u32 %v382_v22, %v379_v21  ;;  %v414_v33 = vshll.u32 %v1667_v23, 16  ;;  %v419_v36 = vshrl.u32 %v1670_v24, 16  ;;  %v422_v37 = vshll.u32 %v1670_v24, 16  ;;  %v1688_v39 = vld [vmem:[%s1624_s17 + $0x30] sm:$0xf] }
  0x1d   : > { %v397_v35 = vor.u32 %v396_v27, %v393_v26  ;;  %v428_v38 = vshll.u32 %v1673_v29, 16  ;;  %v407_v41 = vrot.slane %v405_v31, 4  ;;  %v410_v42 = vrot.slane %v408_v32, 5  ;;  %v1691_v44 = vld [vmem:[%s1624_s17 + $0x34] sm:$0x1] }
  0x1e   : > { %v384_v40 = vrot.slane %v383_v30, 4  ;;  %v416_v43 = vrot.slane %v414_v33, 5  ;;  %v421_v46 = vrot.slane %v419_v36, 4  ;;  %v424_v47 = vrot.slane %v422_v37, 5  ;;  %v1696_v51 = vld [vmem:[%s1624_s17 + $0x38] sm:$0xf] }
  0x1f   : > { %v398_v45 = vrot.slane %v397_v35, 4  ;;  %v430_v48 = vrot.slane %v428_v38, 5  ;;  %v411_v50 = vor.u32 %v410_v42, %v407_v41  ;;  %v433_v52 = vshrl.u32 %v1688_v39, 16  ;;  %v1705_v57 = vld [vmem:[%s1624_s17 + $0x3c] sm:$0x1] }
  0x20   : > { %v389_v49 = vsel %vm1680_vm4, %v384_v40, %v388_v25  ;;  %v436_v53 = vshll.u32 %v1688_v39, 16  ;;  %v425_v56 = vor.u32 %v424_v47, %v421_v46  ;;  %v442_v58 = vshll.u32 %v1691_v44, 16  ;;  %v1713_v3 = vld [vmem:[%s1624_s17] sm:$0xf]  ;;  %v314_v8 = vld [vmem:[%s1624_s17 + $0x4] sm:$0x1] }
  0x21   : > { %v403_v54 = vsel %vm1680_vm4, %v398_v45, %v402_v28  ;;  %v1702_v55 = vunpack.c.l.b16 %v389_v49  ;;  %v412_v60 = vrot.slane %v411_v50, 4  ;;  %v435_v61 = vrot.slane %v433_v52, 4  ;;  %v1724_v11 = vld [vmem:[%s1624_s17 + $0x8] sm:$0xf]  ;;  %v316_v26 = vld [vmem:[%s1624_s17 + $0xc] sm:$0x1] }
  0x22   : > { %v1708_v59 = vunpack.c.l.b16 %v403_v54  ;;  %v438_v62 = vrot.slane %v436_v53, 5  ;;  %v426_v63 = vrot.slane %v425_v56, 4  ;;  %v444_v0 = vrot.slane %v442_v58, 5  ;;  %v342_v45 = vld [vmem:[%s1604_s7 + $0x18] sm:$0xf] }
  0x23   : > { %v447_v1 = vshrl.u32 %v1696_v51, 16  ;;  %v450_v2 = vshll.u32 %v1696_v51, 16  ;;  %v417_v5 = vsel %vm1680_vm4, %v412_v60, %v416_v43  ;;  %v456_v7 = vshll.u32 %v1705_v57, 16  ;;  %v343_v56 = vld [vmem:[%s1604_s7 + $0x1c] sm:$0xf] }
  0x24   : > { %v1717_v4 = vpack.c.b16 %v1708_v59, %v1702_v55  ;;  %v439_v6 = vor.u32 %v438_v62, %v435_v61  ;;  %v431_v14 = vsel %vm1680_vm4, %v426_v63, %v430_v48  ;;  %v1728_v15 = vunpack.c.l.b16 %v417_v5  ;;  %v341_v5 = vld [vmem:[%s1604_s7 + $0x14] sm:$0xf] }
  0x25   : > { %v449_v16 = vrot.slane %v447_v1, 4  ;;  %v452_v17 = vrot.slane %v450_v2, 5  ;;  %v1732_v18 = vunpack.c.l.b16 %v431_v14  ;;  %v458_v21 = vrot.slane %v456_v7, 5 }
  0x26   : > { %1353 = vmatmul.msk.bf16.vlgmr.msra.gmra.mxu1 %vm472_vm3, %v1717_v4  ;;  %v440_v19 = vrot.slane %v439_v6, 4  ;;  %v349_v22 = vshrl.u32 %v1713_v3, 16  ;;  %v352_v27 = vshll.u32 %v1713_v3, 16  ;;  %v358_v28 = vshll.u32 %v314_v8, 16 }
  0x27   : > { %v453_v25 = vor.u32 %v452_v17, %v449_v16  ;;  %v363_v30 = vshrl.u32 %v1724_v11, 16  ;;  %v1740_v31 = vpack.c.b16 %v1732_v18, %v1728_v15  ;;  %v366_v35 = vshll.u32 %v1724_v11, 16  ;;  %v344_v16 = vld [vmem:[%s1604_s7 + $0x20] sm:$0xf] }
  0x28   : > { %v445_v32 = vsel %vm1680_vm4, %v440_v19, %v444_v0  ;;  %v351_v33 = vrot.slane %v349_v22, 4  ;;  %v354_v38 = vrot.slane %v352_v27, 5  ;;  %v360_v40 = vrot.slane %v358_v28, 5 }
  0x29   : > { %v454_v36 = vrot.slane %v453_v25, 4  ;;  %v1745_v37 = vunpack.c.l.b16 %v445_v32  ;;  %1354 = vmatmul.msk.bf16.vlgmr.msra.gmra.mxu2 %vm472_vm3, %v1740_v31  ;;  %v365_v41 = vrot.slane %v363_v30, 4  ;;  %v368_v42 = vrot.slane %v366_v35, 5 }
  0x2a   : > { %v372_v43 = vshll.u32 %v316_v26, 16  ;;  %v355_v47 = vor.u32 %v354_v38, %v351_v33  ;;  %v595_v48 = vrot.slane %v314_v8, 5  ;;  %v599_v49 = vrot.slane %v316_v26, 5 }
  0x2b   : > { %v459_v46 = vsel %vm1680_vm4, %v454_v36, %v458_v21  ;;  %v369_v52 = vor.u32 %v368_v42, %v365_v41  ;;  %v1360_v60 = vrot.slane %v1713_v3, 9  ;;  %v1361_v61 = vrot.slane %v1724_v11, 9 }
  0x2c   : > { %v1752_v50 = vunpack.c.l.b16 %v459_v46  ;;  %v374_v53 = vrot.slane %v372_v43, 5  ;;  %v356_v58 = vrot.slane %v355_v47, 4  ;;  %v887_v62 = vsel %vm485_vm0, %v342_v45, 0 }
  0x2d   : > { %v370_v0 = vrot.slane %v369_v52, 4  ;;  %v526_v1 = vunpack.c.l.b16 %v1713_v3  ;;  %v527_v2 = vunpack.c.l.b16 %v1724_v11  ;;  %896 = vmatpush.bf16.msra.mxu2 %v887_v62  ;;  %v596_v7 = vsel %vm1755_vm7, %v1360_v60, %v595_v48 }
  0x2e   : > { %v1765_v63 = vpack.c.b16 %v1752_v50, %v1745_v37  ;;  %v361_v6 = vsel %vm1680_vm4, %v356_v58, %v360_v40  ;;  %v1776_v8 = vsel %vm1755_vm7, %v1361_v61, %v599_v49  ;;  %v946_v14 = vsel %vm485_vm0, %v343_v56, 0 }
  0x2f   : > { %v375_v3 = vsel %vm1680_vm4, %v370_v0, %v374_v53  ;;  %v460_v11 = vunpack.c.l.b16 %v361_v6  ;;  %v841_v19 = vsel %vm485_vm0, %v341_v5, 0  ;;  %v534_v21 = vpack.c.b16 %v527_v2, %v526_v1  ;;  %v329_v6 = vld [vmem:[%s1624_s17 + $0x40] sm:$0xf] }
  0x30   : > { %1355 = vmatmul.msk.bf16.vlgmr.msra.gmra.mxu3 %vm472_vm3, %v1765_v63  ;;  %v461_v17 = vunpack.c.l.b16 %v375_v3  ;;  %v625_v22 = vunpack.c.l.b16 %v596_v7  ;;  %v626_v25 = vunpack.c.l.b16 %v1776_v8  ;;  %850 = vmatpush.bf16.msra.mxu1 %v841_v19  ;;  %v996_v27 = vsel %vm485_vm0, %v344_v16, 0  ;;  %v331_v8 = vld [vmem:[%s1624_s17 + $0x48] sm:$0xf] }
  0x31   : > { %955 = vmatpush.bf16.msra.mxu3 %v946_v14  ;;  %v528_v30 = vunpack.c.l.b16 %v1632_v9  ;;  %v1362_v32 = vrot.slane %v1632_v9, 9  ;;  %v603_v33 = vrot.slane %v1635_v10, 5  ;;  %v1363_v35 = vrot.slane %v1648_v12, 9 }
  0x32   : > { %v468_v26 = vpack.c.b16 %v461_v17, %v460_v11  ;;  %v633_v28 = vpack.c.b16 %v626_v25, %v625_v22  ;;  %v607_v36 = vrot.slane %v1651_v13, 5  ;;  %v529_v40 = vunpack.c.l.b16 %v1648_v12 }
  0x33   : > { %v691_v38 = vpack.c.b16 %v528_v30, %v527_v2  ;;  %v1800_v41 = vsel %vm1755_vm7, %v1362_v32, %v603_v33  ;;  %v762_v9 = vpack.c.b16 %v1702_v55, %v461_v17  ;;  %v1366_v45 = vrot.slane %v1688_v39, 9  ;;  %v330_v17 = vld [vmem:[%s1624_s17 + $0x44] sm:$0x1] }
  0x34   : > { %1352 = vmatmul.msk.bf16.vlgmr.msra.gmra.mxu0 %vm472_vm3, %v468_v26  ;;  %v1804_v42 = vsel %vm1755_vm7, %v1363_v35, %v607_v36  ;;  %v627_v10 = vunpack.c.l.b16 %v1800_v41  ;;  %v535_v13 = vpack.c.b16 %v529_v40, %v528_v30  ;;  %v619_v46 = vrot.slane %v1691_v44, 5  ;;  %v332_v41 = vld [vmem:[%s1624_s17 + $0x4c] sm:$0x1] }
  0x35   : > { %1005 = vmatpush.bf16.msra.mxu0 %v996_v27  ;;  %v628_v43 = vunpack.c.l.b16 %v1804_v42  ;;  %v1367_v47 = vrot.slane %v1696_v51, 9  ;;  %v623_v55 = vrot.slane %v1705_v57, 5  ;;  %v530_v48 = vunpack.c.l.b16 %v1664_v20 }
  0x36   : > { %1356 = vmatmul.msk.bf16.vlgmr.msrb.gmra.mxu1 %vm472_vm3, %v534_v21  ;;  %v620_v49 = vsel %vm1755_vm7, %v1366_v45, %v619_v46  ;;  %v1364_v44 = vrot.slane %v1664_v20, 9  ;;  %v611_v58 = vrot.slane %v1667_v23, 5  ;;  %v1365_v57 = vrot.slane %v1670_v24, 9 }
  0x37   : > { %v634_v12 = vpack.c.b16 %v628_v43, %v627_v10  ;;  %v1823_v52 = vsel %vm1755_vm7, %v1367_v47, %v623_v55  ;;  %v631_v53 = vunpack.c.l.b16 %v620_v49  ;;  %v615_v60 = vrot.slane %v1673_v29, 5 }
  0x38   : > { %v632_v56 = vunpack.c.l.b16 %v1823_v52  ;;  %v692_v62 = vpack.c.b16 %v530_v48, %v529_v40  ;;  %v531_v0 = vunpack.c.l.b16 %v1670_v24  ;;  %v612_v1 = vsel %vm1755_vm7, %v1364_v44, %v611_v58 }
  0x39   : > { %1368 = vmatmul.msk.bf16.vlgmr.msrb.gmra.mxu2 %vm472_vm3, %v633_v28  ;;  %v616_v20 = vsel %vm1755_vm7, %v1365_v57, %v615_v60  ;;  %v763_v23 = vpack.c.b16 %v1728_v15, %v1708_v59  ;;  %v629_v2 = vunpack.c.l.b16 %v612_v1  ;;  %v532_v7 = vunpack.c.l.b16 %v1688_v39 }
  0x3a   : > { %v1833_v61 = vpack.c.b16 %v632_v56, %v631_v53  ;;  %v536_v29 = vpack.c.b16 %v531_v0, %v530_v48  ;;  %v630_v5 = vunpack.c.l.b16 %v616_v20  ;;  %v748_v14 = vshrl.u32 %v329_v6, 16 }
  0x3b   : > { %v751_v3 = vshll.u32 %v329_v6, 16  ;;  %v693_v11 = vpack.c.b16 %v532_v7, %v531_v0  ;;  %v533_v16 = vunpack.c.l.b16 %v1696_v51  ;;  %v764_v19 = vpack.c.b16 %v1745_v37, %v1732_v18 }
  0x3c   : > { %v635_v24 = vpack.c.b16 %v630_v5, %v629_v2  ;;  %v750_v59 = vrot.slane %v748_v14, 4  ;;  %v757_v26 = vshll.u32 %v330_v17, 16  ;;  %v690_v28 = vunpack.c.l.b16 %v329_v6 }
  0x3d   : > { %v753_v15 = vrot.slane %v751_v3, 5  ;;  %v537_v21 = vpack.c.b16 %v533_v16, %v532_v7  ;;  %v824_v37 = vpack.c.b16 %v627_v10, %v626_v25  ;;  %v825_v33 = vpack.c.b16 %v629_v2, %v628_v43 }
  0x3e   : > { %v759_v27 = vrot.slane %v757_v26, 5  ;;  %v694_v30 = vpack.c.b16 %v690_v28, %v533_v16  ;;  %v927_v25 = vshrl.u32 %v331_v8, 16  ;;  %v930_v35 = vshll.u32 %v331_v8, 16 }
  0x3f   : > { %v754_v22 = vor.u32 %v753_v15, %v750_v59  ;;  %v821_v36 = vrot.slane %v330_v17, 5  ;;  %v881_v45 = vunpack.c.l.b16 %v331_v8  ;;  %v1393_v48 = vrot.slane %v331_v8, 9 }
  0x40   : > { %1372 = vmatmul.msk.bf16.vlgmr.msrb.gmra.mxu3 %vm472_vm3, %v691_v38  ;;  %v929_v38 = vrot.slane %v927_v25, 4  ;;  %v932_v40 = vrot.slane %v930_v35, 5  ;;  %v988_v49 = vrot.slane %v332_v41, 5 }
  0x41   : > { %v755_v39 = vrot.slane %v754_v22, 4  ;;  %v882_v55 = vpack.c.b16 %v881_v45, %v690_v28 }
  0x43   : > { %v760_v51 = vsel %vm1680_vm4, %v755_v39, %v759_v27 }
  0x44   : > { %1376 = vmatmul.msk.bf16.vlgmr.msrb.gmra.mxu0 %vm472_vm3, %v762_v9  ;;  %v761_v32 = vunpack.c.l.b16 %v760_v51  ;;  %v933_v9 = vor.u32 %v932_v40, %v929_v38 }
  0x46   : > { %1357 = vmatmul.msk.bf16.gmra.mxu1 %vm472_vm3, %v535_v13  ;;  %v765_v18 = vpack.c.b16 %v761_v32, %v1752_v50  ;;  %v826_v50 = vpack.c.b16 %v631_v53, %v630_v5  ;;  %v934_v43 = vrot.slane %v933_v9, 4 }
  0x49   : > { %1369 = vmatmul.msk.bf16.gmra.mxu2 %vm472_vm3, %v634_v12 }
  0x50   : > { %1373 = vmatmul.msk.bf16.gmra.mxu3 %vm472_vm3, %v692_v62 }
  0x54   : > { %1377 = vmatmul.msk.bf16.gmra.mxu0 %vm472_vm3, %v763_v23 }
  0x56   : > { %1358 = vmatmul.msk.bf16.gmra.mxu1 %vm472_vm3, %v536_v29 }
  0x59   : > { %1370 = vmatmul.msk.bf16.gmra.mxu2 %vm472_vm3, %v635_v24 }
  0x60   : > { %1374 = vmatmul.msk.bf16.gmra.mxu3 %vm472_vm3, %v693_v11 }
  0x64   : > { %1378 = vmatmul.msk.bf16.gmra.mxu0 %vm472_vm3, %v764_v19 }
  0x66   : > { %1359 = vmatmul.msk.bf16.gmra.mxu1 %vm472_vm3, %v537_v21 }
  0x69   : > { %1371 = vmatmul.msk.bf16.gmra.mxu2 %vm472_vm3, %v1833_v61 }
  0x70   : > { %1375 = vmatmul.msk.bf16.gmra.mxu3 %vm472_vm3, %v694_v30 }
  0x74   : > { %1379 = vmatmul.msk.bf16.gmra.mxu0 %vm472_vm3, %v765_v18 }
  0x76   : > { %1381 = vmatmul.msk.bf16.vlgmr.msra.gmra.mxu1 %vm472_vm3, %v824_v37 }
  0x79   : > { %1385 = vmatmul.msk.bf16.vlgmr.msra.gmra.mxu2 %vm472_vm3, %v535_v13 }
  0x80   : > { %1389 = vmatmul.msk.bf16.vlgmr.msra.gmra.mxu3 %vm472_vm3, %v1717_v4  ;;  %v1380_v4 = vrot.slane %v329_v6, 9 }
  0x82   : > { %v822_v42 = vsel %vm1755_vm7, %v1380_v4, %v821_v36 }
  0x83   : > { %v823_v10 = vunpack.c.l.b16 %v822_v42 }
  0x84   : > { %1394 = vmatmul.msk.bf16.vlgmr.msra.gmra.mxu0 %vm472_vm3, %v634_v12 }
  0x85   : > { %v827_v12 = vpack.c.b16 %v823_v10, %v632_v56 }
  0x86   : > { %1382 = vmatmul.msk.bf16.gmra.mxu1 %vm472_vm3, %v825_v33 }
  0x89   : > { %1386 = vmatmul.msk.bf16.gmra.mxu2 %vm472_vm3, %v536_v29 }
  0x90   : > { %1390 = vmatmul.msk.bf16.gmra.mxu3 %vm472_vm3, %v1740_v31  ;;  %v936_v31 = vshll.u32 %v332_v41, 16 }
  0x92   : > { %v938_v13 = vrot.slane %v936_v31, 5 }
  0x94   : > { %1395 = vmatmul.msk.bf16.gmra.mxu0 %vm472_vm3, %v635_v24  ;;  %v939_v47 = vsel %vm1680_vm4, %v934_v43, %v938_v13 }
  0x95   : > { %v940_v53 = vunpack.c.l.b16 %v939_v47 }
  0x96   : > { %1383 = vmatmul.msk.bf16.gmra.mxu1 %vm472_vm3, %v826_v50 }
  0x97   : > { %v941_v56 = vpack.c.b16 %v940_v53, %v761_v32 }
  0x99   : > { %1387 = vmatmul.msk.bf16.gmra.mxu2 %vm472_vm3, %v537_v21 }
  0xa0   : > { %1391 = vmatmul.msk.bf16.gmra.mxu3 %vm472_vm3, %v1765_v63  ;;  %v989_v63 = vsel %vm1755_vm7, %v1393_v48, %v988_v49 }
  0xa1   : > { %v990_v44 = vunpack.c.l.b16 %v989_v63 }
  0xa3   : > { %v503_v46 = vpop.f32.mrf.mxu1  ;;  %v991_v57 = vpack.c.b16 %v990_v44, %v823_v10 }
  0xa4   : > { %1396 = vmatmul.msk.bf16.gmra.mxu0 %vm472_vm3, %v1833_v61 }
  0xa6   : > { %1384 = vmatmul.msk.bf16.gmra.mxu1 %vm472_vm3, %v827_v12 }
  0xa9   : > { %1388 = vmatmul.msk.bf16.gmra.mxu2 %vm472_vm3, %v882_v55 }
  0xab   : > { %v505_v52 = vpop.f32.mrf.mxu1 }
  0xac   : > { %v508_v58 = vpop.f32.mrf.mxu2 }
  0xb0   : > { %1392 = vmatmul.msk.bf16.gmra.mxu3 %vm472_vm3, %v941_v56 }
  0xb1   : > { %v498_v34 = vpop.f32.mrf.mxu0 }
  0xb3   : > { %v513_v60 = vpop.f32.mrf.mxu3  ;;  %v562_v61 = vpop.f32.mrf.mxu1 }
  0xb4   : > { %v563_v62 = vadd.f32 %v562_v61, %v498_v34  ;;  %1397 = vmatmul.msk.bf16.gmra.mxu0 %vm472_vm3, %v991_v57  ;;  %v510_v0 = vpop.f32.mrf.mxu2 }
  0xb9   : > { %v500_v1 = vpop.f32.mrf.mxu0 }
  0xbb   : > { %v1896_v20 = vpop.f32.mrf.mxu3  ;;  %v564_v23 = vpop.f32.mrf.mxu1 }
  0xbc   : > { %v565_v54 = vadd.f32 %v564_v23, %v500_v1  ;;  %v661_v29 = vpop.f32.mrf.mxu2 }
  0xbd   : > { %v681_v2 = vadd.f32 %v661_v29, %v563_v62 }
  0xc1   : > { %v790_v5 = vpop.f32.mrf.mxu0 }
  0xc3   : > { %v719_v24 = vpop.f32.mrf.mxu3  ;;  %v567_v6 = vpop.f32.mrf.mxu1 }
  0xc4   : > { %v739_v7 = vadd.f32 %v719_v24, %v681_v2  ;;  %v568_v14 = vadd.f32 %v567_v6, %v503_v46  ;;  %v663_v3 = vpop.f32.mrf.mxu2 }
  0xc5   : > { %v682_v11 = vadd.f32 %v663_v3, %v565_v54 }
  0xc6   : > { %v810_v16 = vadd.f32 %v790_v5, %v739_v7 }
  0xc9   : > { %v792_v59 = vpop.f32.mrf.mxu0 }
  0xcb   : > { %v721_v15 = vpop.f32.mrf.mxu3  ;;  %v569_v17 = vpop.f32.mrf.mxu1 }
  0xcc   : > { %v740_v19 = vadd.f32 %v721_v15, %v682_v11  ;;  %v570_v21 = vadd.f32 %v569_v17, %v505_v52  ;;  %v666_v22 = vpop.f32.mrf.mxu2 }
  0xcd   : > { %v683_v26 = vadd.f32 %v666_v22, %v568_v14 }
  0xce   : > { %v811_v39 = vadd.f32 %v792_v59, %v740_v19 }
  0xd1   : > { %v795_v27 = vpop.f32.mrf.mxu0 }
  0xd3   : > { %v724_v28 = vpop.f32.mrf.mxu3  ;;  %v572_v51 = vpop.f32.mrf.mxu1 }
  0xd4   : > { %v741_v30 = vadd.f32 %v724_v28, %v683_v26  ;;  %v573_v32 = vadd.f32 %v572_v51, %v508_v58  ;;  %v668_v18 = vpop.f32.mrf.mxu2 }
  0xd5   : > { %v684_v37 = vadd.f32 %v668_v18, %v570_v21 }
  0xd6   : > { %v812_v33 = vadd.f32 %v795_v27, %v741_v30 }
  0xd9   : > { %v797_v50 = vpop.f32.mrf.mxu0 }
  0xdb   : > { %v726_v8 = vpop.f32.mrf.mxu3  ;;  %v574_v25 = vpop.f32.mrf.mxu1 }
  0xdc   : > { %v742_v35 = vadd.f32 %v726_v8, %v684_v37  ;;  %v575_v4 = vadd.f32 %v574_v25, %v510_v0  ;;  %v671_v36 = vpop.f32.mrf.mxu2 }
  0xdd   : > { %v685_v38 = vadd.f32 %v671_v36, %v573_v32 }
  0xde   : > { %v813_v40 = vadd.f32 %v797_v50, %v742_v35 }
  0xe1   : > { %v800_v41 = vpop.f32.mrf.mxu0 }
  0xe3   : > { %v729_v42 = vpop.f32.mrf.mxu3  ;;  %v577_v9 = vpop.f32.mrf.mxu1 }
  0xe4   : > { %v743_v31 = vadd.f32 %v729_v42, %v685_v38  ;;  %v578_v10 = vadd.f32 %v577_v9, %v513_v60  ;;  %v673_v43 = vpop.f32.mrf.mxu2 }
  0xe5   : > { %v686_v13 = vadd.f32 %v673_v43, %v575_v4 }
  0xe6   : > { %v814_v12 = vadd.f32 %v800_v41, %v743_v31 }
  0xe9   : > { %v802_v45 = vpop.f32.mrf.mxu0 }
  0xeb   : > { %v731_v46 = vpop.f32.mrf.mxu3  ;;  %v579_v47 = vpop.f32.mrf.mxu1 }
  0xec   : > { %v744_v55 = vadd.f32 %v731_v46, %v686_v13  ;;  %v676_v48 = vpop.f32.mrf.mxu2 }
  0xed   : > { %v687_v49 = vadd.f32 %v676_v48, %v578_v10 }
  0xee   : > { %v815_v53 = vadd.f32 %v802_v45, %v744_v55 }
  0xf1   : > { %v805_v63 = vpop.f32.mrf.mxu0 }
  0xf3   : > { %v734_v52 = vpop.f32.mrf.mxu3  ;;  %v852_v56 = vpop.f32.mrf.mxu1 }
  0xf4   : > { %v745_v44 = vadd.f32 %v734_v52, %v687_v49  ;;  %v678_v58 = vpop.f32.mrf.mxu2  ;;  %v872_v0 = vadd.f32 %v852_v56, %v810_v16 }
  0xf6   : > { %v816_v57 = vadd.f32 %v805_v63, %v745_v44 }
  0xf9   : > { %v807_v34 = vpop.f32.mrf.mxu0 }
  0xfb   : > { %v736_v61 = vpop.f32.mrf.mxu3  ;;  %v854_v62 = vpop.f32.mrf.mxu1 }
  0xfc   : > { %v898_v60 = vpop.f32.mrf.mxu2  ;;  %v873_v6 = vadd.f32 %v854_v62, %v811_v39 }
  0xfd   : > { %v918_v1 = vadd.f32 %v898_v60, %v872_v0 }
 0x101   : > { %v1007_v23 = vpop.f32.mrf.mxu0 }
 0x103   : > { %v957_v54 = vpop.f32.mrf.mxu3  ;;  %v857_v29 = vpop.f32.mrf.mxu1 }
 0x104   : > { %v977_v2 = vadd.f32 %v957_v54, %v918_v1  ;;  %v900_v5 = vpop.f32.mrf.mxu2  ;;  %v874_v19 = vadd.f32 %v857_v29, %v812_v33 }
 0x105   : > { %v919_v7 = vadd.f32 %v900_v5, %v873_v6 }
 0x106   : > { %v1898_v24 = vadd.f32 %v1007_v23, %v977_v2 }
 0x109   : > { %v1009_v14 = vpop.f32.mrf.mxu0 }
 0x10b   : > { %v959_v3 = vpop.f32.mrf.mxu3  ;;  %v859_v11 = vpop.f32.mrf.mxu1 }
 0x10c   : > { %v978_v59 = vadd.f32 %v959_v3, %v919_v7  ;;  %v903_v15 = vpop.f32.mrf.mxu2  ;;  %v875_v30 = vadd.f32 %v859_v11, %v813_v40  ;;  %v580_v40 = vadd.f32 %v579_v47, %v1896_v20 }
 0x10d   : > { %v920_v21 = vadd.f32 %v903_v15, %v874_v19 }
 0x10e   : > { %v1900_v17 = vadd.f32 %v1009_v14, %v978_v59  ;;  %v688_v45 = vadd.f32 %v678_v58, %v580_v40 }
 0x110   : > { %v746_v49 = vadd.f32 %v736_v61, %v688_v45 }
 0x111   : > { %v1012_v16 = vpop.f32.mrf.mxu0 }
 0x112   : > { %v817_v60 = vadd.f32 %v807_v34, %v746_v49 }
 0x113   : > { %v962_v22 = vpop.f32.mrf.mxu3  ;;  %v862_v27 = vpop.f32.mrf.mxu1 }
 0x114   : > { %v979_v26 = vadd.f32 %v962_v22, %v920_v21  ;;  %v905_v28 = vpop.f32.mrf.mxu2  ;;  %v876_v25 = vadd.f32 %v862_v27, %v814_v12 }
 0x115   : > { %v921_v32 = vadd.f32 %v905_v28, %v875_v30 }
 0x116   : > { %v1902_v51 = vadd.f32 %v1012_v16, %v979_v26 }
 0x119   : > { %v1014_v39 = vpop.f32.mrf.mxu0 }
 0x11b   : > { %v964_v18 = vpop.f32.mrf.mxu3  ;;  %v864_v35 = vpop.f32.mrf.mxu1 }
 0x11c   : > { %v980_v37 = vadd.f32 %v964_v18, %v921_v32  ;;  %v908_v50 = vpop.f32.mrf.mxu2  ;;  %v877_v9 = vadd.f32 %v864_v35, %v815_v53 }
 0x11d   : > { %v922_v4 = vadd.f32 %v908_v50, %v876_v25 }
 0x11e   : > { %v1904_v8 = vadd.f32 %v1014_v39, %v980_v37 }
 0x121   : > { %v1017_v33 = vpop.f32.mrf.mxu0 }
 0x123   : > { %v967_v36 = vpop.f32.mrf.mxu3  ;;  %v867_v10 = vpop.f32.mrf.mxu1 }
 0x124   : > { %v981_v38 = vadd.f32 %v967_v36, %v922_v4  ;;  %v910_v41 = vpop.f32.mrf.mxu2  ;;  %v878_v12 = vadd.f32 %v867_v10, %v816_v57 }
 0x125   : > { %v923_v31 = vadd.f32 %v910_v41, %v877_v9 }
 0x126   : > { %v1906_v42 = vadd.f32 %v1017_v33, %v981_v38 }
 0x129   : > { %v1019_v43 = vpop.f32.mrf.mxu0 }
 0x12b   : > { %v969_v13 = vpop.f32.mrf.mxu3  ;;  %v869_v52 = vpop.f32.mrf.mxu1 }
 0x12c   : > { %v982_v46 = vadd.f32 %v969_v13, %v923_v31  ;;  %v913_v55 = vpop.f32.mrf.mxu2  ;;  %v879_v1 = vadd.f32 %v869_v52, %v817_v60 }
 0x12d   : > { %v924_v63 = vadd.f32 %v913_v55, %v878_v12 }
 0x12e   : > { %v1032_v48 = vadd.f32 %v1019_v43, %v982_v46 }
 0x131   : > { %v1022_v56 = vpop.f32.mrf.mxu0 }
 0x133   : > { %v972_v44 = vpop.f32.mrf.mxu3 }
 0x134   : > { %v983_v62 = vadd.f32 %v972_v44, %v924_v63  ;;  %v915_v0 = vpop.f32.mrf.mxu2 }
 0x135   : > { %v925_v23 = vadd.f32 %v915_v0, %v879_v1 }
 0x136   : > { %v1033_v53 = vadd.f32 %v1022_v56, %v983_v62 }
 0x139   : > { %v1024_v47 = vpop.f32.mrf.mxu0 }
 0x13a   : > { %1038 = sbr.rel (%p1398_p9) target bundleno = 330 (0x14a), region = 36 }
 0x13b   : > { %v974_v54 = vpop.f32.mrf.mxu3 }
 0x13c   : > { %v984_v20 = vadd.f32 %v974_v54, %v925_v23 }
 0x13e   : > { %v1034_v29 = vadd.f32 %v1024_v47, %v984_v20 }
 0x13f   : > { %v1465_v58 = vld [vmem:[%s2022_s2] ss:$0 sm:$0xff]  ;;  %vm1051_vm8 = vcmask 31744  }
 0x140   : > { %v1043_v57 = vadd.f32 %v1465_v58, %v1898_v24  ;;  %v1044_v34 = vadd.f32 %v1465_v58, %v1900_v17  ;;  %v1045_v61 = vadd.f32 %v1465_v58, %v1902_v51  ;;  %v1046_v2 = vadd.f32 %v1465_v58, %v1904_v8 }
 0x141   : > { %v1047_v5 = vadd.f32 %v1465_v58, %v1906_v42  ;;  %v1048_v6 = vadd.f32 %v1465_v58, %v1032_v48  ;;  %v1049_v7 = vadd.f32 %v1465_v58, %v1033_v53  ;;  %v1050_v14 = vadd.f32 %v1465_v58, %v1034_v29 }
 0x142   : > { %1052 = vst.msk [vmem:[%s1641_s8] sm:$0xff] %vm1051_vm8, %v1043_v57 }
 0x143   : > { %1053 = vst.msk [vmem:[%s1641_s8 + $0x8] sm:$0xff] %vm1051_vm8, %v1044_v34 }
 0x144   : > { %1054 = vst.msk [vmem:[%s1641_s8 + $0x10] sm:$0xff] %vm1051_vm8, %v1045_v61 }
 0x145   : > { %1055 = vst.msk [vmem:[%s1641_s8 + $0x18] sm:$0xff] %vm1051_vm8, %v1046_v2 }
 0x146   : > { %1056 = vst.msk [vmem:[%s1641_s8 + $0x20] sm:$0xff] %vm1051_vm8, %v1047_v5 }
 0x147   : > { %1057 = vst.msk [vmem:[%s1641_s8 + $0x28] sm:$0xff] %vm1051_vm8, %v1048_v6 }
 0x148   : > { %1058 = vst.msk [vmem:[%s1641_s8 + $0x30] sm:$0xff] %vm1051_vm8, %v1049_v7 }
 0x149   : > { %1059 = vst.msk [vmem:[%s1641_s8 + $0x38] sm:$0xff] %vm1051_vm8, %v1050_v14 }
 0x14a PF: > { %p1399_p10 = scmp.le.s32.totalorder %s1496_s18, 0 }
 0x14c   : > { %1063 = sbr.rel (%p1399_p10) target bundleno = 348 (0x15c), region = 40 }
 0x151   : > { %v1064_v3 = vld [vmem:[%s1641_s8] sm:$0xff]  ;;  %vm1080_vm9 = vcmask 31744   ;;  %v1065_v11 = vld [vmem:[%s1641_s8 + $0x8] sm:$0xff]  ;;  %v1066_v59 = vld [vmem:[%s1641_s8 + $0x10] sm:$0xff] }
 0x152   : > { %v1072_v15 = vadd.f32 %v1064_v3, %v1898_v24  ;;  %v1073_v19 = vadd.f32 %v1065_v11, %v1900_v17  ;;  %v1074_v21 = vadd.f32 %v1066_v59, %v1902_v51  ;;  %v1067_v16 = vld [vmem:[%s1641_s8 + $0x18] sm:$0xff]  ;;  %v1068_v22 = vld [vmem:[%s1641_s8 + $0x20] sm:$0xff]  ;;  %v1069_v26 = vld [vmem:[%s1641_s8 + $0x28] sm:$0xff] }
 0x153   : > { %v1075_v27 = vadd.f32 %v1067_v16, %v1904_v8  ;;  %v1070_v28 = vld [vmem:[%s1641_s8 + $0x30] sm:$0xff]  ;;  %v1076_v30 = vadd.f32 %v1068_v22, %v1906_v42  ;;  %v1071_v32 = vld [vmem:[%s1641_s8 + $0x38] sm:$0xff]  ;;  %v1077_v24 = vadd.f32 %v1069_v26, %v1032_v48 }
 0x154   : > { %1081 = vst.msk [vmem:[%s1641_s8] sm:$0xff] %vm1080_vm9, %v1072_v15  ;;  %v1078_v17 = vadd.f32 %v1070_v28, %v1033_v53  ;;  %v1079_v51 = vadd.f32 %v1071_v32, %v1034_v29 }
 0x155   : > { %1082 = vst.msk [vmem:[%s1641_s8 + $0x8] sm:$0xff] %vm1080_vm9, %v1073_v19 }
 0x156   : > { %1083 = vst.msk [vmem:[%s1641_s8 + $0x10] sm:$0xff] %vm1080_vm9, %v1074_v21 }
 0x157   : > { %1084 = vst.msk [vmem:[%s1641_s8 + $0x18] sm:$0xff] %vm1080_vm9, %v1075_v27 }
 0x158   : > { %1085 = vst.msk [vmem:[%s1641_s8 + $0x20] sm:$0xff] %vm1080_vm9, %v1076_v30 }
 0x159   : > { %1086 = vst.msk [vmem:[%s1641_s8 + $0x28] sm:$0xff] %vm1080_vm9, %v1077_v24 }
 0x15a   : > { %1087 = vst.msk [vmem:[%s1641_s8 + $0x30] sm:$0xff] %vm1080_vm9, %v1078_v17 }
 0x15b   : > { %1088 = vst.msk [vmem:[%s1641_s8 + $0x38] sm:$0xff] %vm1080_vm9, %v1079_v51 }
 0x15c PF: > { %p1400_p11 = scmp.ne.s32.totalorder %s1496_s18, 2 }
 0x15e   : > { %1092 = sbr.rel (%p1400_p11) target bundleno = 387 (0x183), region = 44 }
 0x163   : > { %v1093_v39 = vld [vmem:[%s1641_s8] sm:$0xff]  ;;  %v1094_v18 = vld [vmem:[%s1641_s8 + $0x8] sm:$0xff]  ;;  %v1095_v37 = vld [vmem:[%s1641_s8 + $0x10] sm:$0xff]  ;;  %vm1101_vm10 = vcmask 31744   ;;  %vm1123_vm11 = vcmask 24576  }
 0x164   : > { %v1096_v50 = vld [vmem:[%s1641_s8 + $0x18] sm:$0xff]  ;;  %v1102_v8 = vsel %vm1101_vm10, %v1093_v39, 0.0  ;;  %v1103_v25 = vsel %vm1101_vm10, %v1094_v18, 0.0  ;;  %v1105_v35 = vsel %vm1101_vm10, %v1095_v37, 0.0  ;;  %v1125_v4 = vmul.f32 %v1093_v39, %v1093_v39  ;;  %v1097_v33 = vld [vmem:[%s1641_s8 + $0x20] sm:$0xff]  ;;  %v1098_v9 = vld [vmem:[%s1641_s8 + $0x28] sm:$0xff] }
 0x165   : > { %v1104_v36 = vadd.f32 %v1103_v25, %v1102_v8  ;;  %v1107_v38 = vsel %vm1101_vm10, %v1096_v50, 0.0  ;;  %v1126_v41 = vmul.f32 %v1094_v18, %v1094_v18  ;;  %v1127_v42 = vmul.f32 %v1095_v37, %v1095_v37  ;;  %v1099_v46 = vld [vmem:[%s1641_s8 + $0x30] sm:$0xff]  ;;  %v1100_v56 = vld [vmem:[%s1641_s8 + $0x38] sm:$0xff] }
 0x166   : > { %v1128_v10 = vmul.f32 %v1096_v50, %v1096_v50  ;;  %v1109_v40 = vsel %vm1101_vm10, %v1097_v33, 0.0  ;;  %v1129_v43 = vmul.f32 %v1097_v33, %v1097_v33  ;;  %v1133_v13 = vsel %vm1101_vm10, %v1125_v4, 0.0 }
 0x167   : > { %v1106_v31 = vadd.f32 %v1105_v35, %v1104_v36  ;;  %v1134_v45 = vsel %vm1101_vm10, %v1126_v41, 0.0  ;;  %v1136_v12 = vsel %vm1101_vm10, %v1127_v42, 0.0  ;;  %v1111_v49 = vsel %vm1101_vm10, %v1098_v9, 0.0 }
 0x168   : > { %v1135_v48 = vadd.f32 %v1134_v45, %v1133_v13  ;;  %v1130_v63 = vmul.f32 %v1098_v9, %v1098_v9  ;;  %v1138_v52 = vsel %vm1101_vm10, %v1128_v10, 0.0  ;;  %v1113_v60 = vsel %vm1101_vm10, %v1099_v46, 0.0 }
 0x169   : > { %v1108_v55 = vadd.f32 %v1107_v38, %v1106_v31  ;;  %v1131_v0 = vmul.f32 %v1099_v46, %v1099_v46  ;;  %v1140_v53 = vsel %vm1101_vm10, %v1129_v43, 0.0  ;;  %v1115_v54 = vsel %vm1101_vm10, %v1100_v56, 0.0 }
 0x16a   : > { %v1137_v62 = vadd.f32 %v1136_v12, %v1135_v48  ;;  %v1132_v20 = vmul.f32 %v1100_v56, %v1100_v56  ;;  %v1142_v47 = vsel %vm1101_vm10, %v1130_v63, 0.0 }
 0x16b   : > { %v1110_v44 = vadd.f32 %v1109_v40, %v1108_v55  ;;  %v1144_v57 = vsel %vm1101_vm10, %v1131_v0, 0.0 }
 0x16c   : > { %v1139_v23 = vadd.f32 %v1138_v52, %v1137_v62  ;;  %v1146_v2 = vsel %vm1101_vm10, %v1132_v20, 0.0 }
 0x16d   : > { %v1112_v1 = vadd.f32 %v1111_v49, %v1110_v44 }
 0x16e   : > { %v1141_v58 = vadd.f32 %v1140_v53, %v1139_v23 }
 0x16f   : > { %v1114_v29 = vadd.f32 %v1113_v60, %v1112_v1 }
 0x170   : > { %v1143_v61 = vadd.f32 %v1142_v47, %v1141_v58 }
 0x171   : > { %v1116_v34 = vadd.f32 %v1115_v54, %v1114_v29 }
 0x172   : > { %v1145_v6 = vadd.f32 %v1144_v57, %v1143_v61 }
 0x173   : > { %v1117_v5 = vrot.slane %v1116_v34, 4 }
 0x174   : > { %v1147_v14 = vadd.f32 %v1146_v2, %v1145_v6 }
 0x175   : > { %v1118_v7 = vadd.f32 %v1117_v5, %v1116_v34 }
 0x176   : > { %v1148_v11 = vrot.slane %v1147_v14, 4 }
 0x177   : > { %v1119_v3 = vrot.slane %v1118_v7, 2 }
 0x178   : > { %v1149_v15 = vadd.f32 %v1148_v11, %v1147_v14 }
 0x179   : > { %v1120_v59 = vadd.f32 %v1119_v3, %v1118_v7 }
 0x17a   : > { %v1150_v21 = vrot.slane %v1149_v15, 2 }
 0x17b   : > { %v1121_v19 = vrot.slane %v1120_v59, 1 }
 0x17c   : > { %v1151_v22 = vadd.f32 %v1150_v21, %v1149_v15 }
 0x17d   : > { %v1122_v16 = vadd.f32 %v1121_v19, %v1120_v59 }
 0x17e   : > { %v1152_v26 = vrot.slane %v1151_v22, 1 }
 0x17f   : > { %1124 = vst.msk [vmem:[%s304_s10] sm:$0x1] %vm1123_vm11, %v1122_v16 }
 0x180   : > { %v1153_v27 = vadd.f32 %v1152_v26, %v1151_v22 }
 0x182   : > { %1154 = vst.msk [vmem:[%s311_s13] sm:$0x1] %vm1123_vm11, %v1153_v27 }
 0x183 PF: > { %s16_s24 = sadd.s32 1, %s1520_s24   ;;  %s2030_s18 = smov %s1508_s21 }
 0x184   : > { %p13_p12 = scmp.ge.s32.totalorder %s16_s24, 50   ;;  %s2031_s19 = smov %s1512_s22 }
 0x185   : > { %s2032_s20 = smov %s1516_s23  ;;  %s2033_s21 = smov %s2037_s25 }
 0x186   : > { %s2034_s22 = smov %s2041_s26  ;;  %s2035_s23 = smov %s2045_s27 }
 0x187   :  { %15 = sbr.rel (!%p13_p12) target bundleno = 4 (0x4), region = 99 }

// kernel: tile.18
= control target key start
LH: loop header
LB: loop body
LE: loop exit
PB: predicated region body
PF: predicated region fallthrough
CT: control target
= control target key end

     0   :  { %s208_s0 = inlined_call_operand.vmem [shape: f32[4], index: 0, kind: input, shape index: {}]   ;;  %s209_s1 = inlined_call_operand.vmem [shape: f32[256,4], index: 1, kind: output, shape index: {}]  }
   0x1   :  { %v4_v0 = vld [vmem:[%s208_s0] ss:$0 sm:$0xff] }
   0x2   :  { %5 = vst [vmem:[%s209_s1] sm:$0xff] %v4_v0 }
   0x3   :  { %68 = vst [vmem:[%s209_s1 + $0x8] sm:$0xff] %v4_v0 }
   0x4   :  { %69 = vst [vmem:[%s209_s1 + $0x10] sm:$0xff] %v4_v0 }
   0x5   :  { %70 = vst [vmem:[%s209_s1 + $0x18] sm:$0xff] %v4_v0 }
   0x6   :  { %71 = vst [vmem:[%s209_s1 + $0x20] sm:$0xff] %v4_v0 }
   0x7   :  { %72 = vst [vmem:[%s209_s1 + $0x28] sm:$0xff] %v4_v0 }
   0x8   :  { %73 = vst [vmem:[%s209_s1 + $0x30] sm:$0xff] %v4_v0 }
   0x9   :  { %74 = vst [vmem:[%s209_s1 + $0x38] sm:$0xff] %v4_v0 }
   0xa   :  { %75 = vst [vmem:[%s209_s1 + $0x40] sm:$0xff] %v4_v0 }
   0xb   :  { %76 = vst [vmem:[%s209_s1 + $0x48] sm:$0xff] %v4_v0 }
   0xc   :  { %77 = vst [vmem:[%s209_s1 + $0x50] sm:$0xff] %v4_v0 }
   0xd   :  { %78 = vst [vmem:[%s209_s1 + $0x58] sm:$0xff] %v4_v0 }
   0xe   :  { %79 = vst [vmem:[%s209_s1 + $0x60] sm:$0xff] %v4_v0 }
   0xf   :  { %80 = vst [vmem:[%s209_s1 + $0x68] sm:$0xff] %v4_v0 }
  0x10   :  { %81 = vst [vmem:[%s209_s1 + $0x70] sm:$0xff] %v4_v0 }
  0x11   :  { %82 = vst [vmem:[%s209_s1 + $0x78] sm:$0xff] %v4_v0 }
  0x12   :  { %83 = vst [vmem:[%s209_s1 + $0x80] sm:$0xff] %v4_v0 }
  0x13   :  { %84 = vst [vmem:[%s209_s1 + $0x88] sm:$0xff] %v4_v0 }
  0x14   :  { %85 = vst [vmem:[%s209_s1 + $0x90] sm:$0xff] %v4_v0 }
  0x15   :  { %86 = vst [vmem:[%s209_s1 + $0x98] sm:$0xff] %v4_v0 }
  0x16   :  { %87 = vst [vmem:[%s209_s1 + $0xa0] sm:$0xff] %v4_v0 }
  0x17   :  { %88 = vst [vmem:[%s209_s1 + $0xa8] sm:$0xff] %v4_v0 }
  0x18   :  { %89 = vst [vmem:[%s209_s1 + $0xb0] sm:$0xff] %v4_v0 }
  0x19   :  { %90 = vst [vmem:[%s209_s1 + $0xb8] sm:$0xff] %v4_v0 }
  0x1a   :  { %91 = vst [vmem:[%s209_s1 + $0xc0] sm:$0xff] %v4_v0 }
  0x1b   :  { %92 = vst [vmem:[%s209_s1 + $0xc8] sm:$0xff] %v4_v0 }
  0x1c   :  { %93 = vst [vmem:[%s209_s1 + $0xd0] sm:$0xff] %v4_v0 }
  0x1d   :  { %94 = vst [vmem:[%s209_s1 + $0xd8] sm:$0xff] %v4_v0 }
  0x1e   :  { %95 = vst [vmem:[%s209_s1 + $0xe0] sm:$0xff] %v4_v0 }
  0x1f   :  { %96 = vst [vmem:[%s209_s1 + $0xe8] sm:$0xff] %v4_v0 }
  0x20   :  { %97 = vst [vmem:[%s209_s1 + $0xf0] sm:$0xff] %v4_v0 }
  0x21   :  { %98 = vst [vmem:[%s209_s1 + $0xf8] sm:$0xff] %v4_v0 }

// kernel: tile.19
= control target key start
LH: loop header
LB: loop body
LE: loop exit
PB: predicated region body
PF: predicated region fallthrough
CT: control target
= control target key end

     0   :  { %vm5_vm0 = vcmask 1041409   ;;  %vm9_vm1 = vcmask 1042434   ;;  %vm13_vm2 = vcmask 1043459   ;;  %vm17_vm3 = vcmask 1044484   ;;  %s1460_s19 = smov 124   ;;  %s1461_s7 = smov 116   ;;  %s2517_s0 = inlined_call_operand.vmem [shape: f32[256,4], index: 0, kind: input, shape index: {}]   ;;  %s2518_s1 = inlined_call_operand.vmem [shape: f32[1,1024], index: 1, kind: output, shape index: {}]  }
   0x1   :  { %v1174_v0 = vld [vmem:[%s2517_s0 + $0x1f] sm:$0x1]   ;;  %vm21_vm4 = vcmask 1045509   ;;  %vm25_vm5 = vcmask 1046534   ;;  %vm29_vm6 = vcmask 1047559   ;;  %s1462_s9 = smov 120  }
   0x2   :  { %v1175_v1 = vld [vmem:[%s2517_s0 + $0x3e] sm:$0x2]   ;;  %v1190_v10 = vld [vmem:[%s2517_s0 + $0x1d] sm:$0x1]   ;;  %v1182_v25 = vld [vmem:[%s2517_s0 + $0x1e] sm:$0x1]  }
   0x3   :  { %v39_v2 = vsel %vm5_vm0, %v1175_v1, %v1174_v0  ;;  %v1176_v3 = vld [vmem:[%s2517_s0 + $0x5d] sm:$0x4]   ;;  %v1191_v11 = vld [vmem:[%s2517_s0 + $0x3c] sm:$0x2]   ;;  %v1183_v26 = vld [vmem:[%s2517_s0 + $0x3d] sm:$0x2]  }
   0x4   :  { %v1177_v4 = vld [vmem:[%s2517_s0 + $0x7c] sm:$0x8]   ;;  %v43_v6 = vsel %vm9_vm1, %v1176_v3, %v39_v2  ;;  %v1192_v12 = vld [vmem:[%s2517_s0 + $0x5b] sm:$0x4]   ;;  %v109_v15 = vsel %vm5_vm0, %v1191_v11, %v1190_v10  ;;  %v1184_v27 = vld [vmem:[%s2517_s0 + $0x5c] sm:$0x4]   ;;  %v74_v30 = vsel %vm5_vm0, %v1183_v26, %v1182_v25 }
   0x5   :  { %v1178_v5 = vld [vmem:[%s2517_s0 + $0x9b] sm:$0x10]   ;;  %v47_v9 = vsel %vm13_vm2, %v1177_v4, %v43_v6  ;;  %v1193_v16 = vld [vmem:[%s2517_s0 + $0x7a] sm:$0x8]   ;;  %v113_v19 = vsel %vm9_vm1, %v1192_v12, %v109_v15  ;;  %v1185_v31 = vld [vmem:[%s2517_s0 + $0x7b] sm:$0x8]   ;;  %v78_v34 = vsel %vm9_vm1, %v1184_v27, %v74_v30 }
   0x6   :  { %v1179_v7 = vld [vmem:[%s2517_s0 + $0xba] sm:$0x20]   ;;  %v51_v13 = vsel %vm17_vm3, %v1178_v5, %v47_v9  ;;  %v1194_v17 = vld [vmem:[%s2517_s0 + $0x99] sm:$0x10]   ;;  %v117_v24 = vsel %vm13_vm2, %v1193_v16, %v113_v19  ;;  %v1186_v32 = vld [vmem:[%s2517_s0 + $0x9a] sm:$0x10]   ;;  %v82_v39 = vsel %vm13_vm2, %v1185_v31, %v78_v34 }
   0x7   :  { %v1180_v8 = vld [vmem:[%s2517_s0 + $0xd9] sm:$0x40]   ;;  %v55_v18 = vsel %vm21_vm4, %v1179_v7, %v51_v13  ;;  %v1195_v20 = vld [vmem:[%s2517_s0 + $0xb8] sm:$0x20]   ;;  %v121_v29 = vsel %vm17_vm3, %v1194_v17, %v117_v24  ;;  %v1187_v35 = vld [vmem:[%s2517_s0 + $0xb9] sm:$0x20]   ;;  %v86_v44 = vsel %vm17_vm3, %v1186_v32, %v82_v39 }
   0x8   :  { %v1181_v14 = vld [vmem:[%s2517_s0 + $0xf8] sm:$0x80]   ;;  %v1196_v21 = vld [vmem:[%s2517_s0 + $0xd7] sm:$0x40]   ;;  %v59_v23 = vsel %vm25_vm5, %v1180_v8, %v55_v18  ;;  %v125_v33 = vsel %vm21_vm4, %v1195_v20, %v121_v29  ;;  %v1188_v36 = vld [vmem:[%s2517_s0 + $0xd8] sm:$0x40]   ;;  %v90_v48 = vsel %vm21_vm4, %v1187_v35, %v86_v44 }
   0x9   :  { %v1197_v22 = vld [vmem:[%s2517_s0 + $0xf6] sm:$0x80]   ;;  %v63_v28 = vsel %vm29_vm6, %v1181_v14, %v59_v23  ;;  %v1198_v37 = vld [vmem:[%s2517_s0 + $0x1c] sm:$0x1]   ;;  %v129_v38 = vsel %vm25_vm5, %v1196_v21, %v125_v33  ;;  %v1189_v45 = vld [vmem:[%s2517_s0 + $0xf7] sm:$0x80]   ;;  %v94_v53 = vsel %vm25_vm5, %v1188_v36, %v90_v48 }
   0xa   :  { %64 = vrot.lane.b32.xlu0 %v63_v28, %s1460_s19  ;;  %v1199_v40 = vld [vmem:[%s2517_s0 + $0x3b] sm:$0x2]   ;;  %v133_v43 = vsel %vm29_vm6, %v1197_v22, %v129_v38  ;;  %v1222_v52 = vld [vmem:[%s2517_s0 + $0x19] sm:$0x1]   ;;  %v98_v58 = vsel %vm29_vm6, %v1189_v45, %v94_v53  ;;  %v1230_v3 = vld [vmem:[%s2517_s0 + $0x18] sm:$0x1]  }
   0xb   :  { %v1200_v41 = vld [vmem:[%s2517_s0 + $0x5a] sm:$0x4]   ;;  %v144_v46 = vsel %vm5_vm0, %v1199_v40, %v1198_v37  ;;  %134 = vrot.lane.b32.xlu1 %v133_v43, %s1461_s7  ;;  %v1223_v55 = vld [vmem:[%s2517_s0 + $0x38] sm:$0x2]   ;;  %v1231_v4 = vld [vmem:[%s2517_s0 + $0x37] sm:$0x2]  }
   0xc   :  { %v1201_v42 = vld [vmem:[%s2517_s0 + $0x79] sm:$0x8]   ;;  %v148_v49 = vsel %vm9_vm1, %v1200_v41, %v144_v46  ;;  %v1224_v56 = vld [vmem:[%s2517_s0 + $0x57] sm:$0x4]   ;;  %v249_v61 = vsel %vm5_vm0, %v1223_v55, %v1222_v52  ;;  %v284_v7 = vsel %vm5_vm0, %v1231_v4, %v1230_v3  ;;  %v1232_v8 = vld [vmem:[%s2517_s0 + $0x56] sm:$0x4]  }
   0xd   :  { %v1202_v47 = vld [vmem:[%s2517_s0 + $0x98] sm:$0x10]   ;;  %v152_v54 = vsel %vm13_vm2, %v1201_v42, %v148_v49  ;;  %v1225_v57 = vld [vmem:[%s2517_s0 + $0x76] sm:$0x8]   ;;  %v253_v1 = vsel %vm9_vm1, %v1224_v56, %v249_v61  ;;  %v1233_v9 = vld [vmem:[%s2517_s0 + $0x75] sm:$0x8]   ;;  %v288_v14 = vsel %vm9_vm1, %v1232_v8, %v284_v7 }
   0xe   :  { %v1203_v50 = vld [vmem:[%s2517_s0 + $0xb7] sm:$0x20]   ;;  %v156_v59 = vsel %vm17_vm3, %v1202_v47, %v152_v54  ;;  %v1226_v62 = vld [vmem:[%s2517_s0 + $0x95] sm:$0x10]   ;;  %v257_v6 = vsel %vm13_vm2, %v1225_v57, %v253_v1  ;;  %v1234_v10 = vld [vmem:[%s2517_s0 + $0x94] sm:$0x10]   ;;  %v292_v17 = vsel %vm13_vm2, %v1233_v9, %v288_v14 }
   0xf   :  { %v1204_v51 = vld [vmem:[%s2517_s0 + $0xd6] sm:$0x40]   ;;  %v1227_v63 = vld [vmem:[%s2517_s0 + $0xb4] sm:$0x20]   ;;  %v160_v0 = vsel %vm21_vm4, %v1203_v50, %v156_v59  ;;  %v261_v12 = vsel %vm17_vm3, %v1226_v62, %v257_v6  ;;  %v1235_v15 = vld [vmem:[%s2517_s0 + $0xb3] sm:$0x20]   ;;  %v296_v22 = vsel %vm17_vm3, %v1234_v10, %v292_v17 }
  0x10   :  { %v1205_v60 = vld [vmem:[%s2517_s0 + $0xf5] sm:$0x80]   ;;  %v1228_v2 = vld [vmem:[%s2517_s0 + $0xd3] sm:$0x40]   ;;  %v164_v5 = vsel %vm25_vm5, %v1204_v51, %v160_v0  ;;  %v265_v16 = vsel %vm21_vm4, %v1227_v63, %v261_v12  ;;  %v1236_v18 = vld [vmem:[%s2517_s0 + $0xd2] sm:$0x40]   ;;  %v300_v27 = vsel %vm21_vm4, %v1235_v15, %v296_v22 }
  0x11   :  { %v168_v11 = vsel %vm29_vm6, %v1205_v60, %v164_v5  ;;  %v1229_v13 = vld [vmem:[%s2517_s0 + $0xf2] sm:$0x80]   ;;  %v1246_v19 = vld [vmem:[%s2517_s0 + $0x16] sm:$0x1]   ;;  %v269_v21 = vsel %vm25_vm5, %v1228_v2, %v265_v16  ;;  %s1463_s26 = smov 112   ;;  %v304_v35 = vsel %vm25_vm5, %v1236_v18, %v300_v27  ;;  %s1464_s22 = smov 100  }
  0x12   :  { %99 = vrot.lane.b32.xlu0 %v98_v58, %s1462_s9  ;;  %v1247_v20 = vld [vmem:[%s2517_s0 + $0x35] sm:$0x2]   ;;  %v1254_v31 = vld [vmem:[%s2517_s0 + $0x15] sm:$0x1]   ;;  %v273_v34 = vsel %vm29_vm6, %v1229_v13, %v269_v21  ;;  %v1237_v36 = vld [vmem:[%s2517_s0 + $0xf1] sm:$0x80]  }
  0x13   :  { %v354_v23 = vsel %vm5_vm0, %v1247_v20, %v1246_v19  ;;  %v1248_v24 = vld [vmem:[%s2517_s0 + $0x54] sm:$0x4]   ;;  %169 = vrot.lane.b32.xlu1 %v168_v11, %s1463_s26  ;;  %v1255_v32 = vld [vmem:[%s2517_s0 + $0x34] sm:$0x2]   ;;  %v1206_v46 = vld [vmem:[%s2517_s0 + $0x1b] sm:$0x1]   ;;  %v308_v49 = vsel %vm29_vm6, %v1237_v36, %v304_v35 }
  0x14   :  { %v1249_v25 = vld [vmem:[%s2517_s0 + $0x73] sm:$0x8]   ;;  %v358_v28 = vsel %vm9_vm1, %v1248_v24, %v354_v23  ;;  %v1256_v33 = vld [vmem:[%s2517_s0 + $0x53] sm:$0x4]   ;;  %v389_v38 = vsel %vm5_vm0, %v1255_v32, %v1254_v31  ;;  %v1207_v47 = vld [vmem:[%s2517_s0 + $0x3a] sm:$0x2]  }
  0x15   :  { %v1250_v26 = vld [vmem:[%s2517_s0 + $0x92] sm:$0x10]   ;;  %v362_v30 = vsel %vm13_vm2, %v1249_v25, %v358_v28  ;;  %v1257_v39 = vld [vmem:[%s2517_s0 + $0x72] sm:$0x8]   ;;  %v393_v42 = vsel %vm9_vm1, %v1256_v33, %v389_v38  ;;  %v1208_v48 = vld [vmem:[%s2517_s0 + $0x59] sm:$0x4]   ;;  %v179_v53 = vsel %vm5_vm0, %v1207_v47, %v1206_v46 }
  0x16   :  { %v1251_v29 = vld [vmem:[%s2517_s0 + $0xb1] sm:$0x20]   ;;  %v366_v37 = vsel %vm17_vm3, %v1250_v26, %v362_v30  ;;  %v1258_v40 = vld [vmem:[%s2517_s0 + $0x91] sm:$0x10]   ;;  %v397_v45 = vsel %vm13_vm2, %v1257_v39, %v393_v42  ;;  %v1209_v54 = vld [vmem:[%s2517_s0 + $0x78] sm:$0x8]   ;;  %v183_v56 = vsel %vm9_vm1, %v1208_v48, %v179_v53 }
  0x17   :  { %v1252_v41 = vld [vmem:[%s2517_s0 + $0xd0] sm:$0x40]   ;;  %v1259_v43 = vld [vmem:[%s2517_s0 + $0xb0] sm:$0x20]   ;;  %v370_v44 = vsel %vm21_vm4, %v1251_v29, %v366_v37  ;;  %v401_v51 = vsel %vm17_vm3, %v1258_v40, %v397_v45  ;;  %v1210_v55 = vld [vmem:[%s2517_s0 + $0x97] sm:$0x10]   ;;  %v187_v62 = vsel %vm13_vm2, %v1209_v54, %v183_v56 }
  0x18   :  { %v1253_v50 = vld [vmem:[%s2517_s0 + $0xef] sm:$0x80]   ;;  %v1260_v52 = vld [vmem:[%s2517_s0 + $0xcf] sm:$0x40]   ;;  %v1211_v57 = vld [vmem:[%s2517_s0 + $0xb6] sm:$0x20]   ;;  %v374_v60 = vsel %vm25_vm5, %v1252_v41, %v370_v44  ;;  %v405_v61 = vsel %vm21_vm4, %v1259_v43, %v401_v51  ;;  %v191_v3 = vsel %vm17_vm3, %v1210_v55, %v187_v62 }
  0x19   :  { %v1212_v58 = vld [vmem:[%s2517_s0 + $0xd5] sm:$0x40]   ;;  %v1270_v59 = vld [vmem:[%s2517_s0 + $0x13] sm:$0x1]   ;;  %s1465_s14 = smov 96   ;;  %v195_v7 = vsel %vm21_vm4, %v1211_v57, %v191_v3  ;;  %v378_v11 = vsel %vm29_vm6, %v1253_v50, %v374_v60  ;;  %v409_v12 = vsel %vm25_vm5, %v1260_v52, %v405_v61  ;;  %s1466_s6 = smov 108  }
  0x1a   :  { %274 = vrot.lane.b32.xlu0 %v273_v34, %s1464_s22  ;;  %v1271_v63 = vld [vmem:[%s2517_s0 + $0x32] sm:$0x2]   ;;  %v1261_v2 = vld [vmem:[%s2517_s0 + $0xee] sm:$0x80]   ;;  %v1213_v4 = vld [vmem:[%s2517_s0 + $0xf4] sm:$0x80]   ;;  %v199_v13 = vsel %vm25_vm5, %v1212_v58, %v195_v7 }
  0x1b   :  { %v1272_v0 = vld [vmem:[%s2517_s0 + $0x51] sm:$0x4]   ;;  %309 = vrot.lane.b32.xlu1 %v308_v49, %s1465_s14  ;;  %v459_v5 = vsel %vm5_vm0, %v1271_v63, %v1270_v59  ;;  %v1278_v10 = vld [vmem:[%s2517_s0 + $0x12] sm:$0x1]   ;;  %v203_v18 = vsel %vm29_vm6, %v1213_v4, %v199_v13  ;;  %v1214_v26 = vld [vmem:[%s2517_s0 + $0x1a] sm:$0x1]   ;;  %v413_v28 = vsel %vm29_vm6, %v1261_v2, %v409_v12 }
  0x1c   :  { %v1273_v1 = vld [vmem:[%s2517_s0 + $0x70] sm:$0x8]   ;;  %v463_v8 = vsel %vm9_vm1, %v1272_v0, %v459_v5  ;;  %v1279_v15 = vld [vmem:[%s2517_s0 + $0x31] sm:$0x2]   ;;  %204 = vrot.lane.b32.xlu2 %v203_v18, %s1466_s6  ;;  %v1215_v27 = vld [vmem:[%s2517_s0 + $0x39] sm:$0x2]  }
  0x1d   :  { %v1274_v6 = vld [vmem:[%s2517_s0 + $0x8f] sm:$0x10]   ;;  %v467_v14 = vsel %vm13_vm2, %v1273_v1, %v463_v8  ;;  %v1280_v16 = vld [vmem:[%s2517_s0 + $0x50] sm:$0x4]   ;;  %v494_v21 = vsel %vm5_vm0, %v1279_v15, %v1278_v10  ;;  %s1467_s13 = smov 88   ;;  %v214_v31 = vsel %vm5_vm0, %v1215_v27, %v1214_v26  ;;  %s1468_s5 = smov 84  }
  0x1e   :  { %v1275_v9 = vld [vmem:[%s2517_s0 + $0xae] sm:$0x20]   ;;  %v1281_v17 = vld [vmem:[%s2517_s0 + $0x6f] sm:$0x8]   ;;  %v471_v19 = vsel %vm17_vm3, %v1274_v6, %v467_v14  ;;  %v498_v24 = vsel %vm9_vm1, %v1280_v16, %v494_v21  ;;  %v1216_v32 = vld [vmem:[%s2517_s0 + $0x58] sm:$0x4]  }
  0x1f   :  { %v1276_v20 = vld [vmem:[%s2517_s0 + $0xcd] sm:$0x40]   ;;  %v1282_v22 = vld [vmem:[%s2517_s0 + $0x8e] sm:$0x10]   ;;  %v475_v23 = vsel %vm21_vm4, %v1275_v9, %v471_v19  ;;  %v502_v30 = vsel %vm13_vm2, %v1281_v17, %v498_v24  ;;  %v1217_v33 = vld [vmem:[%s2517_s0 + $0x77] sm:$0x8]   ;;  %v218_v37 = vsel %vm9_vm1, %v1216_v32, %v214_v31 }
  0x20   :  { %v1283_v25 = vld [vmem:[%s2517_s0 + $0xad] sm:$0x20]   ;;  %v1277_v29 = vld [vmem:[%s2517_s0 + $0xec] sm:$0x80]   ;;  %v1218_v34 = vld [vmem:[%s2517_s0 + $0x96] sm:$0x10]   ;;  %v506_v35 = vsel %vm17_vm3, %v1282_v22, %v502_v30  ;;  %v479_v40 = vsel %vm25_vm5, %v1276_v20, %v475_v23  ;;  %v222_v42 = vsel %vm13_vm2, %v1217_v33, %v218_v37 }
  0x21   :  { %v1284_v36 = vld [vmem:[%s2517_s0 + $0xcc] sm:$0x40]   ;;  %v1219_v38 = vld [vmem:[%s2517_s0 + $0xb5] sm:$0x20]   ;;  %v510_v41 = vsel %vm21_vm4, %v1283_v25, %v506_v35  ;;  %v1294_v44 = vld [vmem:[%s2517_s0 + $0x10] sm:$0x1]   ;;  %v226_v46 = vsel %vm17_vm3, %v1218_v34, %v222_v42  ;;  %v483_v55 = vsel %vm29_vm6, %v1277_v29, %v479_v40 }
  0x22   :  { %379 = vrot.lane.b32.xlu0 %v378_v11, %s1467_s13  ;;  %v1220_v39 = vld [vmem:[%s2517_s0 + $0xd4] sm:$0x40]   ;;  %v1295_v45 = vld [vmem:[%s2517_s0 + $0x2f] sm:$0x2]   ;;  %v1285_v51 = vld [vmem:[%s2517_s0 + $0xeb] sm:$0x80]   ;;  %v230_v52 = vsel %vm21_vm4, %v1219_v38, %v226_v46  ;;  %v514_v56 = vsel %vm25_vm5, %v1284_v36, %v510_v41 }
  0x23   :  { %v1221_v43 = vld [vmem:[%s2517_s0 + $0xf3] sm:$0x80]   ;;  %414 = vrot.lane.b32.xlu1 %v413_v28, %s1468_s5  ;;  %v564_v47 = vsel %vm5_vm0, %v1295_v45, %v1294_v44  ;;  %v1296_v48 = vld [vmem:[%s2517_s0 + $0x4e] sm:$0x4]   ;;  %v234_v57 = vsel %vm25_vm5, %v1220_v39, %v230_v52  ;;  %v1302_v59 = vld [vmem:[%s2517_s0 + $0xf] sm:$0x1]   ;;  %v518_v7 = vsel %vm29_vm6, %v1285_v51, %v514_v56 }
  0x24   :  { %v1297_v49 = vld [vmem:[%s2517_s0 + $0x6d] sm:$0x8]   ;;  %v568_v53 = vsel %vm9_vm1, %v1296_v48, %v564_v47  ;;  %v1303_v60 = vld [vmem:[%s2517_s0 + $0x2e] sm:$0x2]   ;;  %v238_v62 = vsel %vm29_vm6, %v1221_v43, %v234_v57  ;;  %s1469_s26 = smov 104   ;;  %s1470_s2 = smov 76  }
  0x25   :  { %v1298_v50 = vld [vmem:[%s2517_s0 + $0x8c] sm:$0x10]   ;;  %v572_v58 = vsel %vm13_vm2, %v1297_v49, %v568_v53  ;;  %v1304_v61 = vld [vmem:[%s2517_s0 + $0x4d] sm:$0x4]   ;;  %v599_v0 = vsel %vm5_vm0, %v1303_v60, %v1302_v59  ;;  %239 = vrot.lane.b32.xlu2 %v238_v62, %s1469_s26  ;;  %v1238_v10 = vld [vmem:[%s2517_s0 + $0x17] sm:$0x1]  }
  0x26   :  { %v1299_v54 = vld [vmem:[%s2517_s0 + $0xab] sm:$0x20]   ;;  %v576_v63 = vsel %vm17_vm3, %v1298_v50, %v572_v58  ;;  %v1305_v1 = vld [vmem:[%s2517_s0 + $0x6c] sm:$0x8]   ;;  %v603_v5 = vsel %vm9_vm1, %v1304_v61, %v599_v0  ;;  %v1239_v11 = vld [vmem:[%s2517_s0 + $0x36] sm:$0x2]  }
  0x27   :  { %v1306_v2 = vld [vmem:[%s2517_s0 + $0x8b] sm:$0x10]   ;;  %v580_v3 = vsel %vm21_vm4, %v1299_v54, %v576_v63  ;;  %v1300_v4 = vld [vmem:[%s2517_s0 + $0xca] sm:$0x40]   ;;  %v607_v9 = vsel %vm13_vm2, %v1305_v1, %v603_v5  ;;  %v1240_v12 = vld [vmem:[%s2517_s0 + $0x55] sm:$0x4]   ;;  %v319_v15 = vsel %vm5_vm0, %v1239_v11, %v1238_v10 }
  0x28   :  { %v1307_v6 = vld [vmem:[%s2517_s0 + $0xaa] sm:$0x20]   ;;  %v1301_v8 = vld [vmem:[%s2517_s0 + $0xe9] sm:$0x80]   ;;  %v611_v13 = vsel %vm17_vm3, %v1306_v2, %v607_v9  ;;  %v1241_v16 = vld [vmem:[%s2517_s0 + $0x74] sm:$0x8]   ;;  %v584_v18 = vsel %vm25_vm5, %v1300_v4, %v580_v3  ;;  %v323_v20 = vsel %vm9_vm1, %v1240_v12, %v319_v15 }
  0x29   :  { %v1308_v14 = vld [vmem:[%s2517_s0 + $0xc9] sm:$0x40]   ;;  %v1242_v17 = vld [vmem:[%s2517_s0 + $0x93] sm:$0x10]   ;;  %v615_v19 = vsel %vm21_vm4, %v1307_v6, %v611_v13  ;;  %v1318_v23 = vld [vmem:[%s2517_s0 + $0xd] sm:$0x1]   ;;  %v327_v24 = vsel %vm13_vm2, %v1241_v16, %v323_v20  ;;  %v588_v33 = vsel %vm29_vm6, %v1301_v8, %v584_v18 }
  0x2a   :  { %484 = vrot.lane.b32.xlu0 %v483_v55, %s1470_s2  ;;  %v1243_v21 = vld [vmem:[%s2517_s0 + $0xb2] sm:$0x20]   ;;  %s1471_s23 = smov 72   ;;  %v1319_v25 = vld [vmem:[%s2517_s0 + $0x2c] sm:$0x2]   ;;  %v331_v29 = vsel %vm17_vm3, %v1242_v17, %v327_v24  ;;  %v619_v34 = vsel %vm25_vm5, %v1308_v14, %v615_v19  ;;  %s1472_s21 = smov 64  }
  0x2b   :  { %v1244_v22 = vld [vmem:[%s2517_s0 + $0xd1] sm:$0x40]   ;;  %519 = vrot.lane.b32.xlu1 %v518_v7, %s1471_s23  ;;  %v1320_v26 = vld [vmem:[%s2517_s0 + $0x4b] sm:$0x4]   ;;  %v1309_v28 = vld [vmem:[%s2517_s0 + $0xe8] sm:$0x80]   ;;  %v669_v31 = vsel %vm5_vm0, %v1319_v25, %v1318_v23  ;;  %v335_v35 = vsel %vm21_vm4, %v1243_v21, %v331_v29 }
  0x2c   :  { %v1321_v27 = vld [vmem:[%s2517_s0 + $0x6a] sm:$0x8]   ;;  %v1245_v30 = vld [vmem:[%s2517_s0 + $0xf0] sm:$0x80]   ;;  %v673_v36 = vsel %vm9_vm1, %v1320_v26, %v669_v31  ;;  %v1326_v38 = vld [vmem:[%s2517_s0 + $0xc] sm:$0x1]   ;;  %v339_v39 = vsel %vm25_vm5, %v1244_v22, %v335_v35  ;;  %v623_v49 = vsel %vm29_vm6, %v1309_v28, %v619_v34 }
  0x2d   :  { %v1322_v32 = vld [vmem:[%s2517_s0 + $0x89] sm:$0x10]   ;;  %v677_v40 = vsel %vm13_vm2, %v1321_v27, %v673_v36  ;;  %v1327_v41 = vld [vmem:[%s2517_s0 + $0x2b] sm:$0x2]   ;;  %v343_v44 = vsel %vm29_vm6, %v1245_v30, %v339_v39  ;;  %s1473_s22 = smov 92   ;;  %s1474_s12 = smov 60  }
  0x2e   :  { %v1323_v37 = vld [vmem:[%s2517_s0 + $0xa8] sm:$0x20]   ;;  %v1328_v42 = vld [vmem:[%s2517_s0 + $0x4a] sm:$0x4]   ;;  %v681_v45 = vsel %vm17_vm3, %v1322_v32, %v677_v40  ;;  %v704_v47 = vsel %vm5_vm0, %v1327_v41, %v1326_v38  ;;  %344 = vrot.lane.b32.xlu2 %v343_v44, %s1473_s22  ;;  %v1262_v54 = vld [vmem:[%s2517_s0 + $0x14] sm:$0x1]  }
  0x2f   :  { %v1329_v43 = vld [vmem:[%s2517_s0 + $0x69] sm:$0x8]   ;;  %v1324_v46 = vld [vmem:[%s2517_s0 + $0xc7] sm:$0x40]   ;;  %v685_v50 = vsel %vm21_vm4, %v1323_v37, %v681_v45  ;;  %v708_v52 = vsel %vm9_vm1, %v1328_v42, %v704_v47  ;;  %v1263_v56 = vld [vmem:[%s2517_s0 + $0x33] sm:$0x2]  }
  0x30   :  { %v1330_v48 = vld [vmem:[%s2517_s0 + $0x88] sm:$0x10]   ;;  %v1325_v51 = vld [vmem:[%s2517_s0 + $0xe6] sm:$0x80]   ;;  %v712_v55 = vsel %vm13_vm2, %v1329_v43, %v708_v52  ;;  %v1264_v57 = vld [vmem:[%s2517_s0 + $0x52] sm:$0x4]   ;;  %v689_v59 = vsel %vm25_vm5, %v1324_v46, %v685_v50  ;;  %v424_v62 = vsel %vm5_vm0, %v1263_v56, %v1262_v54 }
  0x31   :  { %v1331_v53 = vld [vmem:[%s2517_s0 + $0xa7] sm:$0x20]   ;;  %v1265_v58 = vld [vmem:[%s2517_s0 + $0x71] sm:$0x8]   ;;  %v716_v60 = vsel %vm17_vm3, %v1330_v48, %v712_v55  ;;  %v428_v3 = vsel %vm9_vm1, %v1264_v57, %v424_v62  ;;  %v1342_v5 = vld [vmem:[%s2517_s0 + $0xa] sm:$0x1]   ;;  %v693_v12 = vsel %vm29_vm6, %v1325_v51, %v689_v59 }
  0x32   :  { %589 = vrot.lane.b32.xlu0 %v588_v33, %s1472_s21  ;;  %v1332_v61 = vld [vmem:[%s2517_s0 + $0xc6] sm:$0x40]   ;;  %v1266_v63 = vld [vmem:[%s2517_s0 + $0x90] sm:$0x10]   ;;  %v720_v1 = vsel %vm21_vm4, %v1331_v53, %v716_v60  ;;  %v1343_v6 = vld [vmem:[%s2517_s0 + $0x29] sm:$0x2]   ;;  %v432_v7 = vsel %vm13_vm2, %v1265_v58, %v428_v3 }
  0x33   :  { %v1267_v0 = vld [vmem:[%s2517_s0 + $0xaf] sm:$0x20]   ;;  %624 = vrot.lane.b32.xlu1 %v623_v49, %s1474_s12  ;;  %v1333_v2 = vld [vmem:[%s2517_s0 + $0xe5] sm:$0x80]   ;;  %v774_v8 = vsel %vm5_vm0, %v1343_v6, %v1342_v5  ;;  %v1344_v9 = vld [vmem:[%s2517_s0 + $0x48] sm:$0x4]   ;;  %v724_v13 = vsel %vm25_vm5, %v1332_v61, %v720_v1  ;;  %v436_v14 = vsel %vm17_vm3, %v1266_v63, %v432_v7 }
  0x34   :  { %v1268_v4 = vld [vmem:[%s2517_s0 + $0xce] sm:$0x40]   ;;  %v1345_v10 = vld [vmem:[%s2517_s0 + $0x67] sm:$0x8]   ;;  %v778_v16 = vsel %vm9_vm1, %v1344_v9, %v774_v8  ;;  %v440_v18 = vsel %vm21_vm4, %v1267_v0, %v436_v14  ;;  %v1350_v20 = vld [vmem:[%s2517_s0 + $0x9] sm:$0x1]   ;;  %v728_v29 = vsel %vm29_vm6, %v1333_v2, %v724_v13 }
  0x35   :  { %v1346_v11 = vld [vmem:[%s2517_s0 + $0x86] sm:$0x10]   ;;  %v1269_v15 = vld [vmem:[%s2517_s0 + $0xed] sm:$0x80]   ;;  %v782_v19 = vsel %vm13_vm2, %v1345_v10, %v778_v16  ;;  %v1351_v21 = vld [vmem:[%s2517_s0 + $0x28] sm:$0x2]   ;;  %v444_v23 = vsel %vm25_vm5, %v1268_v4, %v440_v18 }
  0x36   :  { %v1347_v17 = vld [vmem:[%s2517_s0 + $0xa5] sm:$0x20]   ;;  %v1352_v22 = vld [vmem:[%s2517_s0 + $0x47] sm:$0x4]   ;;  %v786_v24 = vsel %vm17_vm3, %v1346_v11, %v782_v19  ;;  %v809_v26 = vsel %vm5_vm0, %v1351_v21, %v1350_v20  ;;  %s1475_s14 = smov 52   ;;  %v448_v30 = vsel %vm29_vm6, %v1269_v15, %v444_v23  ;;  %s1476_s19 = smov 80  }
  0x37   :  { %v1348_v25 = vld [vmem:[%s2517_s0 + $0xc4] sm:$0x40]   ;;  %v1353_v27 = vld [vmem:[%s2517_s0 + $0x66] sm:$0x8]   ;;  %v790_v31 = vsel %vm21_vm4, %v1347_v17, %v786_v24  ;;  %v813_v33 = vsel %vm9_vm1, %v1352_v22, %v809_v26  ;;  %449 = vrot.lane.b32.xlu2 %v448_v30, %s1476_s19  ;;  %v1286_v36 = vld [vmem:[%s2517_s0 + $0x11] sm:$0x1]  }
  0x38   :  { %v1354_v28 = vld [vmem:[%s2517_s0 + $0x85] sm:$0x10]   ;;  %v1349_v32 = vld [vmem:[%s2517_s0 + $0xe3] sm:$0x80]   ;;  %v817_v35 = vsel %vm13_vm2, %v1353_v27, %v813_v33  ;;  %v1287_v37 = vld [vmem:[%s2517_s0 + $0x30] sm:$0x2]   ;;  %v794_v39 = vsel %vm25_vm5, %v1348_v25, %v790_v31 }
  0x39   :  { %v1355_v34 = vld [vmem:[%s2517_s0 + $0xa4] sm:$0x20]   ;;  %v1288_v38 = vld [vmem:[%s2517_s0 + $0x4f] sm:$0x4]   ;;  %v821_v40 = vsel %vm17_vm3, %v1354_v28, %v817_v35  ;;  %v529_v42 = vsel %vm5_vm0, %v1287_v37, %v1286_v36  ;;  %s1477_s3 = smov 48   ;;  %v798_v55 = vsel %vm29_vm6, %v1349_v32, %v794_v39  ;;  %s1478_s5 = smov 40  }
  0x3a   :  { %694 = vrot.lane.b32.xlu0 %v693_v12, %s1475_s14  ;;  %v1356_v41 = vld [vmem:[%s2517_s0 + $0xc3] sm:$0x40]   ;;  %v1289_v43 = vld [vmem:[%s2517_s0 + $0x6e] sm:$0x8]   ;;  %v825_v45 = vsel %vm21_vm4, %v1355_v34, %v821_v40  ;;  %v533_v47 = vsel %vm9_vm1, %v1288_v38, %v529_v42  ;;  %v1366_v50 = vld [vmem:[%s2517_s0 + $0x7] sm:$0x1]  }
  0x3b   :  { %v1290_v44 = vld [vmem:[%s2517_s0 + $0x8d] sm:$0x10]   ;;  %729 = vrot.lane.b32.xlu1 %v728_v29, %s1477_s3  ;;  %v1357_v46 = vld [vmem:[%s2517_s0 + $0xe2] sm:$0x80]   ;;  %v537_v51 = vsel %vm13_vm2, %v1289_v43, %v533_v47  ;;  %v1367_v52 = vld [vmem:[%s2517_s0 + $0x26] sm:$0x2]   ;;  %v829_v56 = vsel %vm25_vm5, %v1356_v41, %v825_v45 }
  0x3c   :  { %v1291_v48 = vld [vmem:[%s2517_s0 + $0xac] sm:$0x20]   ;;  %v1368_v53 = vld [vmem:[%s2517_s0 + $0x45] sm:$0x4]   ;;  %v541_v57 = vsel %vm17_vm3, %v1290_v44, %v537_v51  ;;  %v879_v59 = vsel %vm5_vm0, %v1367_v52, %v1366_v50  ;;  %v1374_v1 = vld [vmem:[%s2517_s0 + $0x6] sm:$0x1]   ;;  %v833_v7 = vsel %vm29_vm6, %v1357_v46, %v829_v56 }
  0x3d   :  { %v1292_v49 = vld [vmem:[%s2517_s0 + $0xcb] sm:$0x40]   ;;  %v1369_v54 = vld [vmem:[%s2517_s0 + $0x64] sm:$0x8]   ;;  %v545_v61 = vsel %vm21_vm4, %v1291_v48, %v541_v57  ;;  %v883_v62 = vsel %vm9_vm1, %v1368_v53, %v879_v59  ;;  %v1375_v4 = vld [vmem:[%s2517_s0 + $0x25] sm:$0x2]  }
  0x3e   :  { %v1293_v58 = vld [vmem:[%s2517_s0 + $0xea] sm:$0x80]   ;;  %v1370_v60 = vld [vmem:[%s2517_s0 + $0x83] sm:$0x10]   ;;  %v549_v2 = vsel %vm25_vm5, %v1292_v49, %v545_v61  ;;  %v887_v3 = vsel %vm13_vm2, %v1369_v54, %v883_v62  ;;  %v1376_v5 = vld [vmem:[%s2517_s0 + $0x44] sm:$0x4]   ;;  %v914_v11 = vsel %vm5_vm0, %v1375_v4, %v1374_v1 }
  0x3f   :  { %v1371_v63 = vld [vmem:[%s2517_s0 + $0xa2] sm:$0x20]   ;;  %v1377_v6 = vld [vmem:[%s2517_s0 + $0x63] sm:$0x8]   ;;  %v553_v8 = vsel %vm29_vm6, %v1293_v58, %v549_v2  ;;  %v891_v9 = vsel %vm17_vm3, %v1370_v60, %v887_v3  ;;  %s1479_s12 = smov 68   ;;  %v918_v15 = vsel %vm9_vm1, %v1376_v5, %v914_v11  ;;  %s1480_s25 = smov 36  }
  0x40   :  { %v1372_v0 = vld [vmem:[%s2517_s0 + $0xc1] sm:$0x40]   ;;  %v1378_v12 = vld [vmem:[%s2517_s0 + $0x82] sm:$0x10]   ;;  %554 = vrot.lane.b32.xlu2 %v553_v8, %s1479_s12  ;;  %v895_v14 = vsel %vm21_vm4, %v1371_v63, %v891_v9  ;;  %v1310_v17 = vld [vmem:[%s2517_s0 + $0xe] sm:$0x1]   ;;  %v922_v20 = vsel %vm13_vm2, %v1377_v6, %v918_v15 }
  0x41   :  { %v1373_v10 = vld [vmem:[%s2517_s0 + $0xe0] sm:$0x80]   ;;  %v1379_v13 = vld [vmem:[%s2517_s0 + $0xa1] sm:$0x20]   ;;  %v1311_v18 = vld [vmem:[%s2517_s0 + $0x2d] sm:$0x2]   ;;  %v899_v19 = vsel %vm25_vm5, %v1372_v0, %v895_v14  ;;  %v926_v25 = vsel %vm17_vm3, %v1378_v12, %v922_v20 }
  0x42   :  { %799 = vrot.lane.b32.xlu0 %v798_v55, %s1478_s5  ;;  %v1380_v16 = vld [vmem:[%s2517_s0 + $0xc0] sm:$0x40]   ;;  %v634_v21 = vsel %vm5_vm0, %v1311_v18, %v1310_v17  ;;  %v1312_v22 = vld [vmem:[%s2517_s0 + $0x4c] sm:$0x4]   ;;  %v930_v30 = vsel %vm21_vm4, %v1379_v13, %v926_v25  ;;  %v1390_v33 = vld [vmem:[%s2517_s0 + $0x4] sm:$0x1]   ;;  %v903_v35 = vsel %vm29_vm6, %v1373_v10, %v899_v19 }
  0x43   :  { %v1313_v23 = vld [vmem:[%s2517_s0 + $0x6b] sm:$0x8]   ;;  %834 = vrot.lane.b32.xlu1 %v833_v7, %s1480_s25  ;;  %v1381_v26 = vld [vmem:[%s2517_s0 + $0xdf] sm:$0x80]   ;;  %v638_v27 = vsel %vm9_vm1, %v1312_v22, %v634_v21  ;;  %v1391_v34 = vld [vmem:[%s2517_s0 + $0x23] sm:$0x2]   ;;  %v934_v36 = vsel %vm25_vm5, %v1380_v16, %v930_v30 }
  0x44   :  { %v1314_v24 = vld [vmem:[%s2517_s0 + $0x8a] sm:$0x10]   ;;  %v642_v31 = vsel %vm13_vm2, %v1313_v23, %v638_v27  ;;  %v984_v38 = vsel %vm5_vm0, %v1391_v34, %v1390_v33  ;;  %v1392_v39 = vld [vmem:[%s2517_s0 + $0x42] sm:$0x4]   ;;  %v1398_v48 = vld [vmem:[%s2517_s0 + $0x3] sm:$0x1]   ;;  %v938_v51 = vsel %vm29_vm6, %v1381_v26, %v934_v36 }
  0x45   :  { %v1315_v28 = vld [vmem:[%s2517_s0 + $0xa9] sm:$0x20]   ;;  %v646_v37 = vsel %vm17_vm3, %v1314_v24, %v642_v31  ;;  %v1393_v40 = vld [vmem:[%s2517_s0 + $0x61] sm:$0x8]   ;;  %v988_v43 = vsel %vm9_vm1, %v1392_v39, %v984_v38  ;;  %v1399_v49 = vld [vmem:[%s2517_s0 + $0x22] sm:$0x2]  }
  0x46   :  { %v1316_v29 = vld [vmem:[%s2517_s0 + $0xc8] sm:$0x40]   ;;  %v1394_v41 = vld [vmem:[%s2517_s0 + $0x80] sm:$0x10]   ;;  %v650_v42 = vsel %vm21_vm4, %v1315_v28, %v646_v37  ;;  %v992_v47 = vsel %vm13_vm2, %v1393_v40, %v988_v43  ;;  %v1400_v50 = vld [vmem:[%s2517_s0 + $0x41] sm:$0x4]   ;;  %v1019_v54 = vsel %vm5_vm0, %v1399_v49, %v1398_v48 }
  0x47   :  { %v1317_v32 = vld [vmem:[%s2517_s0 + $0xe7] sm:$0x80]   ;;  %v1395_v44 = vld [vmem:[%s2517_s0 + $0x9f] sm:$0x20]   ;;  %v654_v46 = vsel %vm25_vm5, %v1316_v29, %v650_v42  ;;  %s1481_s25 = smov 28   ;;  %v996_v53 = vsel %vm17_vm3, %v1394_v41, %v992_v47  ;;  %s1482_s30 = smov 56   ;;  %v1023_v59 = vsel %vm9_vm1, %v1400_v50, %v1019_v54 }
  0x48   :  { %v1396_v45 = vld [vmem:[%s2517_s0 + $0xbe] sm:$0x40]   ;;  %v658_v52 = vsel %vm29_vm6, %v1317_v32, %v654_v46  ;;  %v1401_v55 = vld [vmem:[%s2517_s0 + $0x60] sm:$0x8]   ;;  %v1000_v57 = vsel %vm21_vm4, %v1395_v44, %v996_v53  ;;  %v1334_v0 = vld [vmem:[%s2517_s0 + $0xb] sm:$0x1]  }
  0x49   :  { %v1402_v56 = vld [vmem:[%s2517_s0 + $0x7f] sm:$0x10]   ;;  %659 = vrot.lane.b32.xlu2 %v658_v52, %s1482_s30  ;;  %v1397_v58 = vld [vmem:[%s2517_s0 + $0xdd] sm:$0x80]   ;;  %v1004_v62 = vsel %vm25_vm5, %v1396_v45, %v1000_v57  ;;  %v1027_v63 = vsel %vm13_vm2, %v1401_v55, %v1023_v59  ;;  %v1335_v1 = vld [vmem:[%s2517_s0 + $0x2a] sm:$0x2]  }
  0x4a   :  { %904 = vrot.lane.b32.xlu0 %v903_v35, %s1481_s25  ;;  %v1403_v60 = vld [vmem:[%s2517_s0 + $0x9e] sm:$0x20]   ;;  %v1336_v2 = vld [vmem:[%s2517_s0 + $0x49] sm:$0x4]   ;;  %s1483_s14 = smov 24   ;;  %v1031_v3 = vsel %vm17_vm3, %v1402_v56, %v1027_v63  ;;  %v739_v5 = vsel %vm5_vm0, %v1335_v1, %v1334_v0  ;;  %v1008_v13 = vsel %vm29_vm6, %v1397_v58, %v1004_v62  ;;  %s1485_s27 = smov 44  }
  0x4b   :  { %v1404_v61 = vld [vmem:[%s2517_s0 + $0xbd] sm:$0x40]   ;;  %939 = vrot.lane.b32.xlu1 %v938_v51, %s1483_s14  ;;  %v1337_v6 = vld [vmem:[%s2517_s0 + $0x68] sm:$0x8]   ;;  %v1035_v8 = vsel %vm21_vm4, %v1403_v60, %v1031_v3  ;;  %v743_v9 = vsel %vm9_vm1, %v1336_v2, %v739_v5  ;;  %v1414_v12 = vld [vmem:[%s2517_s0 + $0x1] sm:$0x1]  }
  0x4c   :  { %v1405_v4 = vld [vmem:[%s2517_s0 + $0xdc] sm:$0x80]   ;;  %v1338_v7 = vld [vmem:[%s2517_s0 + $0x87] sm:$0x10]   ;;  %v1039_v14 = vsel %vm25_vm5, %v1404_v61, %v1035_v8  ;;  %v747_v15 = vsel %vm13_vm2, %v1337_v6, %v743_v9  ;;  %v1415_v16 = vld [vmem:[%s2517_s0 + $0x20] sm:$0x2]  }
  0x4d   :  { %v1339_v10 = vld [vmem:[%s2517_s0 + $0xa6] sm:$0x20]   ;;  %v1416_v17 = vld [vmem:[%s2517_s0 + $0x3f] sm:$0x4]   ;;  %v751_v19 = vsel %vm17_vm3, %v1338_v7, %v747_v15  ;;  %v1089_v21 = vsel %vm5_vm0, %v1415_v16, %v1414_v12  ;;  %v1358_v27 = vld [vmem:[%s2517_s0 + $0x8] sm:$0x1]   ;;  %v1043_v28 = vsel %vm29_vm6, %v1405_v4, %v1039_v14 }
  0x4e   :  { %v1340_v11 = vld [vmem:[%s2517_s0 + $0xc5] sm:$0x40]   ;;  %v1417_v18 = vld [vmem:[%s2517_s0 + $0x5e] sm:$0x8]   ;;  %v755_v23 = vsel %vm21_vm4, %v1339_v10, %v751_v19  ;;  %v1093_v24 = vsel %vm9_vm1, %v1416_v17, %v1089_v21  ;;  %s1484_s14 = smov 16   ;;  %s1486_s5 = smov 12  }
  0x4f   :  { %v1341_v20 = vld [vmem:[%s2517_s0 + $0xe4] sm:$0x80]   ;;  %v1418_v22 = vld [vmem:[%s2517_s0 + $0x7d] sm:$0x10]   ;;  %v759_v29 = vsel %vm25_vm5, %v1340_v11, %v755_v23  ;;  %v1097_v30 = vsel %vm13_vm2, %v1417_v18, %v1093_v24  ;;  %v1359_v31 = vld [vmem:[%s2517_s0 + $0x27] sm:$0x2]  }
  0x50   :  { %v1419_v25 = vld [vmem:[%s2517_s0 + $0x9c] sm:$0x20]   ;;  %v1360_v32 = vld [vmem:[%s2517_s0 + $0x46] sm:$0x4]   ;;  %v763_v34 = vsel %vm29_vm6, %v1341_v20, %v759_v29  ;;  %v1101_v35 = vsel %vm17_vm3, %v1418_v22, %v1097_v30  ;;  %v844_v37 = vsel %vm5_vm0, %v1359_v31, %v1358_v27  ;;  %v1382_v43 = vld [vmem:[%s2517_s0 + $0x5] sm:$0x1]  }
  0x51   :  { %v1420_v26 = vld [vmem:[%s2517_s0 + $0xbb] sm:$0x40]   ;;  %v1361_v33 = vld [vmem:[%s2517_s0 + $0x65] sm:$0x8]   ;;  %764 = vrot.lane.b32.xlu2 %v763_v34, %s1485_s27  ;;  %v1105_v40 = vsel %vm21_vm4, %v1419_v25, %v1101_v35  ;;  %v848_v41 = vsel %vm9_vm1, %v1360_v32, %v844_v37  ;;  %v1383_v44 = vld [vmem:[%s2517_s0 + $0x24] sm:$0x2]  }
  0x52   :  { %1009 = vrot.lane.b32.xlu0 %v1008_v13, %s1484_s14  ;;  %v1421_v36 = vld [vmem:[%s2517_s0 + $0xda] sm:$0x80]   ;;  %v1362_v38 = vld [vmem:[%s2517_s0 + $0x84] sm:$0x10]   ;;  %v1109_v45 = vsel %vm25_vm5, %v1420_v26, %v1105_v40  ;;  %v852_v46 = vsel %vm13_vm2, %v1361_v33, %v848_v41  ;;  %v949_v47 = vsel %vm5_vm0, %v1383_v44, %v1382_v43  ;;  %v1384_v48 = vld [vmem:[%s2517_s0 + $0x43] sm:$0x4]  }
  0x53   :  { %v1363_v39 = vld [vmem:[%s2517_s0 + $0xa3] sm:$0x20]   ;;  %1044 = vrot.lane.b32.xlu1 %v1043_v28, %s1486_s5  ;;  %v1385_v49 = vld [vmem:[%s2517_s0 + $0x62] sm:$0x8]   ;;  %v856_v51 = vsel %vm17_vm3, %v1362_v38, %v852_v46  ;;  %v953_v53 = vsel %vm9_vm1, %v1384_v48, %v949_v47  ;;  %v1113_v54 = vsel %vm29_vm6, %v1421_v36, %v1109_v45  ;;  %v1406_v57 = vld [vmem:[%s2517_s0 + $0x2] sm:$0x1]  }
  0x54   :  { %v1364_v42 = vld [vmem:[%s2517_s0 + $0xc2] sm:$0x40]   ;;  %v1386_v50 = vld [vmem:[%s2517_s0 + $0x81] sm:$0x10]   ;;  %v860_v55 = vsel %vm21_vm4, %v1363_v39, %v856_v51  ;;  %v957_v56 = vsel %vm13_vm2, %v1385_v49, %v953_v53  ;;  %v1407_v58 = vld [vmem:[%s2517_s0 + $0x21] sm:$0x2]  }
  0x55   :  { %v1365_v52 = vld [vmem:[%s2517_s0 + $0xe1] sm:$0x80]   ;;  %v864_v59 = vsel %vm25_vm5, %v1364_v42, %v860_v55  ;;  %v961_v60 = vsel %vm17_vm3, %v1386_v50, %v957_v56  ;;  %v1387_v61 = vld [vmem:[%s2517_s0 + $0xa0] sm:$0x20]   ;;  %v1054_v62 = vsel %vm5_vm0, %v1407_v58, %v1406_v57  ;;  %v1408_v63 = vld [vmem:[%s2517_s0 + $0x40] sm:$0x4]  }
  0x56   :  { %v868_v0 = vsel %vm29_vm6, %v1365_v52, %v864_v59  ;;  %s1487_s22 = smov 4   ;;  %v1058_v1 = vsel %vm9_vm1, %v1408_v63, %v1054_v62  ;;  %v1409_v2 = vld [vmem:[%s2517_s0 + $0x5f] sm:$0x8]   ;;  %v965_v3 = vsel %vm21_vm4, %v1387_v61, %v961_v60  ;;  %v1388_v4 = vld [vmem:[%s2517_s0 + $0xbf] sm:$0x40]   ;;  %s1488_s29 = smov 32  }
  0x57   :  { %v1168_v5 = vld [vmem:[%s2517_s0 + $0x3e] sm:$0x4]   ;;  %v1062_v9 = vsel %vm13_vm2, %v1409_v2, %v1058_v1  ;;  %v1410_v10 = vld [vmem:[%s2517_s0 + $0x7e] sm:$0x10]   ;;  %v969_v13 = vsel %vm25_vm5, %v1388_v4, %v965_v3  ;;  %v1389_v14 = vld [vmem:[%s2517_s0 + $0xde] sm:$0x80]  }
  0x58   :  { %v1169_v6 = vld [vmem:[%s2517_s0 + $0x5d] sm:$0x8]   ;;  %v1066_v19 = vsel %vm17_vm3, %v1410_v10, %v1062_v9  ;;  %v1411_v20 = vld [vmem:[%s2517_s0 + $0x9d] sm:$0x20]   ;;  %v973_v23 = vsel %vm29_vm6, %v1389_v14, %v969_v13  ;;  %vm31_vm7 = vcmask 31744   ;;  %s1489_s23 = smov 20  }
  0x59   :  { %869 = vrot.lane.b32.xlu2 %v868_v0, %s1488_s29  ;;  %v2_v7 = vld [vmem:[%s2517_s0] sm:$0x1]   ;;  %v1070_v26 = vsel %vm21_vm4, %v1411_v20, %v1066_v19  ;;  %v1412_v27 = vld [vmem:[%s2517_s0 + $0xbc] sm:$0x40]   ;;  %vm66_vm8 = vcmask 1048544   ;;  %vm101_vm9 = vcmask 1015744  }
  0x5a   :  { %1114 = vrot.lane.b32.xlu0 %v1113_v54, %s1487_s22  ;;  %v1167_v8 = vld [vmem:[%s2517_s0 + $0x1f] sm:$0x2]   ;;  %v1074_v29 = vsel %vm25_vm5, %v1412_v27, %v1070_v26  ;;  %v1413_v30 = vld [vmem:[%s2517_s0 + $0xdb] sm:$0x80]   ;;  %vm136_vm10 = vcmask 982944   ;;  %vm171_vm11 = vcmask 950144  }
  0x5b   :  { %v1170_v11 = vld [vmem:[%s2517_s0 + $0x7c] sm:$0x10]   ;;  %v6_v12 = vsel %vm5_vm0, %v1167_v8, %v2_v7  ;;  %v1078_v31 = vsel %vm29_vm6, %v1413_v30, %v1074_v29  ;;  %vm206_vm12 = vcmask 917344   ;;  %vm241_vm13 = vcmask 884544  }
  0x5c   :  { %v1171_v15 = vld [vmem:[%s2517_s0 + $0x9b] sm:$0x20]   ;;  %v10_v16 = vsel %vm9_vm1, %v1168_v5, %v6_v12  ;;  %vm276_vm14 = vcmask 851744   ;;  %vm311_vm15 = vcmask 818944   ;;  %vm346_vm0 = vcmask 786144  }
  0x5d   :  { %v1172_v17 = vld [vmem:[%s2517_s0 + $0xba] sm:$0x40]   ;;  %v14_v18 = vsel %vm13_vm2, %v1169_v6, %v10_v16  ;;  %vm381_vm1 = vcmask 753344   ;;  %vm416_vm2 = vcmask 720544  }
  0x5e   :  { %v1173_v21 = vld [vmem:[%s2517_s0 + $0xd9] sm:$0x80]   ;;  %v18_v22 = vsel %vm17_vm3, %v1170_v11, %v14_v18  ;;  %s1490_s0 = smov 8   ;;  %vm451_vm3 = vcmask 687744  }
  0x5f   :  { %v22_v24 = vsel %vm21_vm4, %v1171_v15, %v18_v22  ;;  %vm486_vm4 = vcmask 654944  }
  0x60   :  { %v26_v25 = vsel %vm25_vm5, %v1172_v17, %v22_v24  ;;  %vm521_vm5 = vcmask 622144  }
  0x61   :  { %v30_v28 = vsel %vm29_vm6, %v1173_v21, %v26_v25  ;;  %974 = vrot.lane.b32.xlu2 %v973_v23, %s1489_s23  ;;  %vm556_vm6 = vcmask 589344  }
  0x62   :  { %32 = vst.msk [vmem:[#allocation0] ss:$8 sm:$0xf] %vm31_vm7, %v30_v28  }
  0x63   :  { %33 = vst.msk [vmem:[#allocation0] ss:$8 sm:$0xf0] %vm31_vm7, %v30_v28   ;;  %vm591_vm7 = vcmask 556544  }
  0x69   :  { %1079 = vrot.lane.b32.xlu2 %v1078_v31, %s1490_s0 }
  0x76   :  { %v205_v32 = vpop.permute.xlu2 %204  }
  0x7c   :  { %v65_v33 = vpop.permute.xlu0 %64  }
  0x7d   :  { %67 = vst.msk [vmem:[#allocation0] ss:$8 sm:$0xf] %vm66_vm8, %v65_v33   ;;  %v135_v34 = vpop.permute.xlu1 %134  }
  0x7e   :  { %68 = vst.msk [vmem:[#allocation0] ss:$8 sm:$0xf0] %vm66_vm8, %v65_v33   ;;  %vm626_vm8 = vcmask 523744  }
  0x7f   :  { %v240_v35 = vpop.permute.xlu2 %239  }
  0x84   :  { %v100_v36 = vpop.permute.xlu0 %99  }
  0x85   :  { %102 = vst.msk [vmem:[#allocation0] ss:$8 sm:$0xf] %vm101_vm9, %v100_v36   ;;  %v170_v37 = vpop.permute.xlu1 %169  }
  0x86   :  { %103 = vst.msk [vmem:[#allocation0] ss:$8 sm:$0xf0] %vm101_vm9, %v100_v36   ;;  %vm661_vm9 = vcmask 490944  }
  0x87   :  { %137 = vst.msk [vmem:[#allocation0] ss:$8 sm:$0xf] %vm136_vm10, %v135_v34  }
  0x88   :  { %138 = vst.msk [vmem:[#allocation0] ss:$8 sm:$0xf0] %vm136_vm10, %v135_v34   ;;  %v345_v39 = vpop.permute.xlu2 %344   ;;  %vm696_vm10 = vcmask 458144  }
  0x89   :  { %172 = vst.msk [vmem:[#allocation0] ss:$8 sm:$0xf] %vm171_vm11, %v170_v37  }
  0x8a   :  { %173 = vst.msk [vmem:[#allocation0] ss:$8 sm:$0xf0] %vm171_vm11, %v170_v37   ;;  %vm731_vm11 = vcmask 425344  }
  0x8b   :  { %207 = vst.msk [vmem:[#allocation0] ss:$8 sm:$0xf] %vm206_vm12, %v205_v32  }
  0x8c   :  { %208 = vst.msk [vmem:[#allocation0] ss:$8 sm:$0xf0] %vm206_vm12, %v205_v32   ;;  %v275_v38 = vpop.permute.xlu0 %274   ;;  %vm766_vm12 = vcmask 392544  }
  0x8d   :  { %242 = vst.msk [vmem:[#allocation0] ss:$8 sm:$0xf] %vm241_vm13, %v240_v35   ;;  %v310_v40 = vpop.permute.xlu1 %309  }
  0x8e   :  { %243 = vst.msk [vmem:[#allocation0] ss:$8 sm:$0xf0] %vm241_vm13, %v240_v35   ;;  %vm801_vm13 = vcmask 359744  }
  0x8f   :  { %277 = vst.msk [vmem:[#allocation0] ss:$8 sm:$0xf] %vm276_vm14, %v275_v38  }
  0x90   :  { %278 = vst.msk [vmem:[#allocation0] ss:$8 sm:$0xf0] %vm276_vm14, %v275_v38   ;;  %vm836_vm14 = vcmask 326944  }
  0x91   :  { %312 = vst.msk [vmem:[#allocation0] ss:$8 sm:$0xf] %vm311_vm15, %v310_v40   ;;  %v450_v42 = vpop.permute.xlu2 %449  }
  0x92   :  { %313 = vst.msk [vmem:[#allocation0] ss:$8 sm:$0xf0] %vm311_vm15, %v310_v40   ;;  %vm871_vm15 = vcmask 294144  }
  0x93   :  { %347 = vst.msk [vmem:[#allocation0] ss:$8 sm:$0xf] %vm346_vm0, %v345_v39  }
  0x94   :  { %348 = vst.msk [vmem:[#allocation0] ss:$8 sm:$0xf0] %vm346_vm0, %v345_v39   ;;  %v380_v41 = vpop.permute.xlu0 %379   ;;  %vm906_vm0 = vcmask 261344  }
  0x95   :  { %382 = vst.msk [vmem:[#allocation0] ss:$8 sm:$0xf] %vm381_vm1, %v380_v41   ;;  %v415_v43 = vpop.permute.xlu1 %414  }
  0x96   :  { %383 = vst.msk [vmem:[#allocation0] ss:$8 sm:$0xf0] %vm381_vm1, %v380_v41   ;;  %vm941_vm1 = vcmask 228544  }
  0x97   :  { %417 = vst.msk [vmem:[#allocation0] ss:$8 sm:$0xf] %vm416_vm2, %v415_v43  }
  0x98   :  { %418 = vst.msk [vmem:[#allocation0] ss:$8 sm:$0xf0] %vm416_vm2, %v415_v43   ;;  %vm976_vm2 = vcmask 195744  }
  0x99   :  { %452 = vst.msk [vmem:[#allocation0] ss:$8 sm:$0xf] %vm451_vm3, %v450_v42  }
  0x9a   :  { %453 = vst.msk [vmem:[#allocation0] ss:$8 sm:$0xf0] %vm451_vm3, %v450_v42   ;;  %v555_v45 = vpop.permute.xlu2 %554   ;;  %vm1011_vm3 = vcmask 162944  }
  0x9c   :  { %v485_v44 = vpop.permute.xlu0 %484  }
  0x9d   :  { %487 = vst.msk [vmem:[#allocation0] ss:$8 sm:$0xf] %vm486_vm4, %v485_v44   ;;  %v520_v46 = vpop.permute.xlu1 %519  }
  0x9e   :  { %488 = vst.msk [vmem:[#allocation0] ss:$8 sm:$0xf0] %vm486_vm4, %v485_v44   ;;  %vm1046_vm4 = vcmask 130144  }
  0x9f   :  { %522 = vst.msk [vmem:[#allocation0] ss:$8 sm:$0xf] %vm521_vm5, %v520_v46  }
  0xa0   :  { %523 = vst.msk [vmem:[#allocation0] ss:$8 sm:$0xf0] %vm521_vm5, %v520_v46   ;;  %vm1081_vm5 = vcmask 97344  }
  0xa1   :  { %557 = vst.msk [vmem:[#allocation0] ss:$8 sm:$0xf] %vm556_vm6, %v555_v45  }
  0xa2   :  { %558 = vst.msk [vmem:[#allocation0] ss:$8 sm:$0xf0] %vm556_vm6, %v555_v45   ;;  %vm1116_vm6 = vcmask 64544  }
  0xa3   :  { %v660_v48 = vpop.permute.xlu2 %659  }
  0xa4   :  { %v590_v47 = vpop.permute.xlu0 %589  }
  0xa5   :  { %592 = vst.msk [vmem:[#allocation0] ss:$8 sm:$0xf] %vm591_vm7, %v590_v47   ;;  %v625_v49 = vpop.permute.xlu1 %624  }
  0xa6   :  { %593 = vst.msk [vmem:[#allocation0] ss:$8 sm:$0xf0] %vm591_vm7, %v590_v47  }
  0xa7   :  { %627 = vst.msk [vmem:[#allocation0] ss:$8 sm:$0xf] %vm626_vm8, %v625_v49  }
  0xa8   :  { %628 = vst.msk [vmem:[#allocation0] ss:$8 sm:$0xf0] %vm626_vm8, %v625_v49  }
  0xa9   :  { %662 = vst.msk [vmem:[#allocation0] ss:$8 sm:$0xf] %vm661_vm9, %v660_v48  }
  0xaa   :  { %663 = vst.msk [vmem:[#allocation0] ss:$8 sm:$0xf0] %vm661_vm9, %v660_v48  }
  0xab   :  { %v765_v51 = vpop.permute.xlu2 %764  }
  0xac   :  { %v695_v50 = vpop.permute.xlu0 %694  }
  0xad   :  { %697 = vst.msk [vmem:[#allocation0] ss:$8 sm:$0xf] %vm696_vm10, %v695_v50   ;;  %v730_v52 = vpop.permute.xlu1 %729  }
  0xae   :  { %698 = vst.msk [vmem:[#allocation0] ss:$8 sm:$0xf0] %vm696_vm10, %v695_v50  }
  0xaf   :  { %732 = vst.msk [vmem:[#allocation0] ss:$8 sm:$0xf] %vm731_vm11, %v730_v52  }
  0xb0   :  { %733 = vst.msk [vmem:[#allocation0] ss:$8 sm:$0xf0] %vm731_vm11, %v730_v52  }
  0xb1   :  { %767 = vst.msk [vmem:[#allocation0] ss:$8 sm:$0xf] %vm766_vm12, %v765_v51  }
  0xb2   :  { %768 = vst.msk [vmem:[#allocation0] ss:$8 sm:$0xf0] %vm766_vm12, %v765_v51  }
  0xb3   :  { %v870_v54 = vpop.permute.xlu2 %869  }
  0xb4   :  { %v800_v53 = vpop.permute.xlu0 %799  }
  0xb5   :  { %802 = vst.msk [vmem:[#allocation0] ss:$8 sm:$0xf] %vm801_vm13, %v800_v53   ;;  %v835_v55 = vpop.permute.xlu1 %834  }
  0xb6   :  { %803 = vst.msk [vmem:[#allocation0] ss:$8 sm:$0xf0] %vm801_vm13, %v800_v53  }
  0xb7   :  { %837 = vst.msk [vmem:[#allocation0] ss:$8 sm:$0xf] %vm836_vm14, %v835_v55  }
  0xb8   :  { %838 = vst.msk [vmem:[#allocation0] ss:$8 sm:$0xf0] %vm836_vm14, %v835_v55  }
  0xb9   :  { %872 = vst.msk [vmem:[#allocation0] ss:$8 sm:$0xf] %vm871_vm15, %v870_v54  }
  0xba   :  { %873 = vst.msk [vmem:[#allocation0] ss:$8 sm:$0xf0] %vm871_vm15, %v870_v54  }
  0xbb   :  { %v975_v57 = vpop.permute.xlu2 %974  }
  0xbc   :  { %v905_v56 = vpop.permute.xlu0 %904  }
  0xbd   :  { %907 = vst.msk [vmem:[#allocation0] ss:$8 sm:$0xf] %vm906_vm0, %v905_v56   ;;  %v940_v58 = vpop.permute.xlu1 %939  }
  0xbe   :  { %908 = vst.msk [vmem:[#allocation0] ss:$8 sm:$0xf0] %vm906_vm0, %v905_v56  }
  0xbf   :  { %942 = vst.msk [vmem:[#allocation0] ss:$8 sm:$0xf] %vm941_vm1, %v940_v58  }
  0xc0   :  { %943 = vst.msk [vmem:[#allocation0] ss:$8 sm:$0xf0] %vm941_vm1, %v940_v58  }
  0xc1   :  { %977 = vst.msk [vmem:[#allocation0] ss:$8 sm:$0xf] %vm976_vm2, %v975_v57  }
  0xc2   :  { %978 = vst.msk [vmem:[#allocation0] ss:$8 sm:$0xf0] %vm976_vm2, %v975_v57  }
  0xc3   :  { %v1080_v60 = vpop.permute.xlu2 %1079  }
  0xc4   :  { %v1010_v59 = vpop.permute.xlu0 %1009  }
  0xc5   :  { %1012 = vst.msk [vmem:[#allocation0] ss:$8 sm:$0xf] %vm1011_vm3, %v1010_v59   ;;  %v1045_v61 = vpop.permute.xlu1 %1044  }
  0xc6   :  { %1013 = vst.msk [vmem:[#allocation0] ss:$8 sm:$0xf0] %vm1011_vm3, %v1010_v59  }
  0xc7   :  { %1047 = vst.msk [vmem:[#allocation0] ss:$8 sm:$0xf] %vm1046_vm4, %v1045_v61  }
  0xc8   :  { %1048 = vst.msk [vmem:[#allocation0] ss:$8 sm:$0xf0] %vm1046_vm4, %v1045_v61  }
  0xc9   :  { %1082 = vst.msk [vmem:[#allocation0] ss:$8 sm:$0xf] %vm1081_vm5, %v1080_v60  }
  0xca   :  { %1083 = vst.msk [vmem:[#allocation0] ss:$8 sm:$0xf0] %vm1081_vm5, %v1080_v60  }
  0xcc   :  { %v1115_v62 = vpop.permute.xlu0 %1114  }
  0xcd   :  { %1117 = vst.msk [vmem:[#allocation0] ss:$8 sm:$0xf] %vm1116_vm6, %v1115_v62  }
  0xce   :  { %1118 = vst.msk [vmem:[#allocation0] ss:$8 sm:$0xf0] %vm1116_vm6, %v1115_v62  }
  0xd4   :  { %v1121_v63 = vld [vmem:[#allocation0] sm:$0x1]  ;;  %v1126_v0 = vld [vmem:[#allocation0 + $0x8] sm:$0x1]  ;;  %v1132_v1 = vld [vmem:[#allocation0 + $0x10] sm:$0x1] }
  0xd5   :  { %1124 = vst [vmem:[%s2518_s1] sm:$0x1] %v1121_v63  ;;  %v1138_v2 = vld [vmem:[#allocation0 + $0x18] sm:$0x1]  ;;  %v1144_v3 = vld [vmem:[#allocation0 + $0x20] sm:$0x1] }
  0xd6   :  { %1422 = vst [vmem:[%s2518_s1 + $0x1] sm:$0x1] %v1126_v0  ;;  %v1150_v4 = vld [vmem:[#allocation0 + $0x28] sm:$0x1]  ;;  %v1156_v5 = vld [vmem:[#allocation0 + $0x30] sm:$0x1] }
  0xd7   :  { %1423 = vst [vmem:[%s2518_s1 + $0x2] sm:$0x1] %v1132_v1  ;;  %v1162_v6 = vld [vmem:[#allocation0 + $0x38] sm:$0x1] }
  0xd8   :  { %1424 = vst [vmem:[%s2518_s1 + $0x3] sm:$0x1] %v1138_v2 }
  0xd9   :  { %1425 = vst [vmem:[%s2518_s1 + $0x4] sm:$0x1] %v1144_v3 }
  0xda   :  { %1426 = vst [vmem:[%s2518_s1 + $0x5] sm:$0x1] %v1150_v4 }
  0xdb   :  { %1427 = vst [vmem:[%s2518_s1 + $0x6] sm:$0x1] %v1156_v5 }
  0xdc   :  { %1428 = vst [vmem:[%s2518_s1 + $0x7] sm:$0x1] %v1162_v6 }

// kernel: decoder_forward.5
= control target key start
LH: loop header
LB: loop body
LE: loop exit
PB: predicated region body
PF: predicated region fallthrough
CT: control target
= control target key end

     0   :  { %s168_s0 = inlined_call_operand.vmem [shape: f32[8,1024], index: 0, kind: input, shape index: {}]   ;;  %s169_s1 = inlined_call_operand.vmem [shape: f32[1,1024], index: 1, kind: input, shape index: {}]   ;;  %s170_s2 = inlined_call_operand.vmem [shape: f32[1,1024], index: 2, kind: input, shape index: {}]   ;;  %s171_s3 = inlined_call_operand.vmem [shape: f32[8,1024], index: 3, kind: output, shape index: {}]  }
   0x1   :  { %v14_v0 = vld [vmem:[%s168_s0] sm:$0xff]  ;;  %v15_v5 = vld [vmem:[%s168_s0 + $0x8] sm:$0xff]  ;;  %v16_v8 = vld [vmem:[%s168_s0 + $0x10] sm:$0xff] }
   0x2   :  { %v22_v1 = vld [vmem:[%s169_s1] sm:$0xff]  ;;  %v17_v11 = vld [vmem:[%s168_s0 + $0x18] sm:$0xff]  ;;  %v19_v19 = vld [vmem:[%s168_s0 + $0x28] sm:$0xff] }
   0x3   :  { %v48_v2 = vld [vmem:[%s170_s2] sm:$0xff]  ;;  %v24_v3 = vperm.slane %v22_v1, 0  ;;  %v25_v6 = vperm.slane %v22_v1, 1  ;;  %v26_v9 = vperm.slane %v22_v1, 2  ;;  %v27_v12 = vperm.slane %v22_v1, 3  ;;  %v20_v24 = vld [vmem:[%s168_s0 + $0x30] sm:$0xff] }
   0x4   :  { %v50_v4 = vperm.slane %v48_v2, 0  ;;  %v51_v7 = vperm.slane %v48_v2, 1  ;;  %v52_v10 = vperm.slane %v48_v2, 2  ;;  %v53_v13 = vperm.slane %v48_v2, 3  ;;  %v18_v14 = vld [vmem:[%s168_s0 + $0x20] sm:$0xff]  ;;  %v21_v37 = vld [vmem:[%s168_s0 + $0x38] sm:$0xff] }
   0x5   :  { %v40_v15 = vmul.f32 %v24_v3, %v14_v0  ;;  %v41_v16 = vmul.f32 %v25_v6, %v15_v5  ;;  %v28_v17 = vperm.slane %v22_v1, 4  ;;  %v54_v18 = vperm.slane %v48_v2, 4 }
   0x6   :  { %v42_v20 = vmul.f32 %v26_v9, %v16_v8  ;;  %v43_v21 = vmul.f32 %v27_v12, %v17_v11  ;;  %v29_v22 = vperm.slane %v22_v1, 5  ;;  %v55_v23 = vperm.slane %v48_v2, 5 }
   0x7   :  { %v66_v25 = vadd.f32 %v50_v4, %v40_v15  ;;  %v67_v26 = vadd.f32 %v51_v7, %v41_v16  ;;  %v44_v27 = vmul.f32 %v28_v17, %v18_v14  ;;  %v30_v28 = vperm.slane %v22_v1, 6 }
   0x8   :  { %v68_v29 = vadd.f32 %v52_v10, %v42_v20  ;;  %v69_v30 = vadd.f32 %v53_v13, %v43_v21  ;;  %v45_v31 = vmul.f32 %v29_v22, %v19_v19  ;;  %v56_v32 = vperm.slane %v48_v2, 6 }
   0x9   :  { %v74_v33 = vmax.f32 %v66_v25, 0.0  ;;  %v75_v34 = vmax.f32 %v67_v26, 0.0  ;;  %v70_v35 = vadd.f32 %v54_v18, %v44_v27  ;;  %v46_v36 = vmul.f32 %v30_v28, %v20_v24 }
   0xa   :  { %v76_v38 = vmax.f32 %v68_v29, 0.0  ;;  %v77_v39 = vmax.f32 %v69_v30, 0.0  ;;  %v71_v40 = vadd.f32 %v55_v23, %v45_v31  ;;  %v31_v41 = vperm.slane %v22_v1, 7 }
   0xb   :  { %82 = vst [vmem:[%s171_s3] sm:$0xff] %v74_v33  ;;  %v78_v42 = vmax.f32 %v70_v35, 0.0  ;;  %v72_v43 = vadd.f32 %v56_v32, %v46_v36  ;;  %v57_v44 = vperm.slane %v48_v2, 7 }
   0xc   :  { %83 = vst [vmem:[%s171_s3 + $0x8] sm:$0xff] %v75_v34  ;;  %v79_v45 = vmax.f32 %v71_v40, 0.0  ;;  %v47_v46 = vmul.f32 %v31_v41, %v21_v37 }
   0xd   :  { %84 = vst [vmem:[%s171_s3 + $0x10] sm:$0xff] %v76_v38  ;;  %v80_v47 = vmax.f32 %v72_v43, 0.0 }
   0xe   :  { %85 = vst [vmem:[%s171_s3 + $0x18] sm:$0xff] %v77_v39  ;;  %v73_v48 = vadd.f32 %v57_v44, %v47_v46 }
   0xf   :  { %86 = vst [vmem:[%s171_s3 + $0x20] sm:$0xff] %v78_v42 }
  0x10   :  { %87 = vst [vmem:[%s171_s3 + $0x28] sm:$0xff] %v79_v45  ;;  %v81_v49 = vmax.f32 %v73_v48, 0.0 }
  0x11   :  { %88 = vst [vmem:[%s171_s3 + $0x30] sm:$0xff] %v80_v47 }
  0x12   :  { %89 = vst [vmem:[%s171_s3 + $0x38] sm:$0xff] %v81_v49 }

</bundles_post_ra>
